<compile_context>
chip_gen: v7x
topology: tpu7x:2x2x1
jax: 0.10.0
libtpu: 0.0.40
codegen_flags: <defaults>
</compile_context>

<pallas_src>
import functools

import jax
import jax.numpy as jnp
from jax import lax
from jax.experimental import pallas as pl
from jax.experimental.pallas import tpu as pltpu

BN_EPS = 1e-5


# ----------------------------------------------------------------------------
# Fused Pallas kernel: L x (depthwise 3x3 -> BN -> ReLU -> 1x1 -> BN -> ReLU)
#                      + identity shortcut, all in the lane-dense packed layout.
# ----------------------------------------------------------------------------
def _mini_block_kernel(x_ref, dw_ref, b1_ref, pw_ref, b2_ref, o_ref, xpad_ref,
                       *, H, C, L):
    """x_ref   : (1, H, W*C)    bf16 lane-dense packed NHWC input
       dw_ref  : (L, 9, W*C)    f32 depthwise taps, BN1 scale + W-edge zeros folded
       b1_ref  : (L, W*C)       f32 folded BN1 bias
       pw_ref  : (L, W*C, W*C)  bf16 block-diagonal 1x1 conv weights, BN2 scale folded
       b2_ref  : (L, W*C)       f32 folded BN2 bias
       o_ref   : (1, H, W*C)    bf16
       xpad_ref: (H+2, W*C)     f32 persistent padded-activation scratch
    """
    WC = x_ref.shape[-1]
    x = x_ref[0].astype(jnp.float32)                 # upcast once; compute in f32

    # Zero the two halo rows of the padded-activation scratch.  Unconditional
    # (NOT pl.when(program_id == 0)): with "parallel" semantics each core owns
    # its own scratch, so every grid step must see zeroed halos.
    zrow = jnp.zeros((1, WC), jnp.float32)
    xpad_ref[0:1, :] = zrow
    xpad_ref[H + 1:H + 2, :] = zrow

    h = x
    for l in range(L):                               # static unroll (L is tiny)
        xpad_ref[1:H + 1, :] = h                     # rows 1..H; halos stay zero
        xp = xpad_ref[...]                           # (H+2, WC)
        # Hoisted W-shift: 2 XLU rolls per layer instead of 6 per-tap rolls.
        # Lanes that wrap across the W boundary are killed by the zeros folded
        # into the packed depthwise weights (tap_mask below).
        xp_by_dj = (pltpu.roll(xp, shift=C, axis=1),        # dj == 0 taps (read w-1)
                    xp,                                      # dj == 1 taps
                    pltpu.roll(xp, shift=WC - C, axis=1))    # dj == 2 taps (read w+1)
        dwl = dw_ref[l]                              # (9, WC)

        # Three per-kernel-row partial accumulators: shorter VPU dep chain.
        row_acc = []
        for di in range(3):
            a = None
            for dj in range(3):
                tap = di * 3 + dj
                t = xp_by_dj[dj][di:di + H, :] * dwl[tap:tap + 1, :]
                a = t if a is None else a + t
            row_acc.append(a)
        acc = (row_acc[0] + row_acc[1]) + row_acc[2]

        hmid = jnp.maximum(acc + b1_ref[l][None, :], 0.0)            # BN1 bias + ReLU
        # bf16 x bf16 MXU matmul with f32 accumulate (native MXU path).
        y = jnp.dot(hmid.astype(jnp.bfloat16), pw_ref[l],
                    preferred_element_type=jnp.float32)              # 1x1 conv
        h = jnp.maximum(y + b2_ref[l][None, :], 0.0)                 # BN2 bias + ReLU

    o_ref[0] = (h + x).astype(o_ref.dtype)           # identity shortcut (stride == 1)


# ----------------------------------------------------------------------------
# Host-side parameter packing (BN folding, lane-dense tiling, block-diag 1x1)
# ----------------------------------------------------------------------------
def pack_mini_block_params(layer_params, W):
    C = layer_params[0]["dw"].shape[-1]
    WC = W * C
    lane = jnp.arange(WC)
    keep_mid = jnp.ones((WC,), jnp.float32)
    keep_left = (lane >= C).astype(jnp.float32)            # dj == 0 (reads w-1): kill w=0
    keep_right = (lane < (W - 1) * C).astype(jnp.float32)  # dj == 2 (reads w+1): kill w=W-1
    # NOTE: these W-edge zeros are what make the kernel's lane-roll wrap-around
    # safe.  Never prepare depthwise weights without tap_mask.
    tap_mask = jnp.stack(
        [keep_left if t % 3 == 0 else keep_right if t % 3 == 2 else keep_mid
         for t in range(9)])                               # (9, WC)

    dwp, b1p, pwp, b2p = [], [], [], []
    for p in layer_params:
        dw_s = (p["dw"] * p["s1"][None, None, :]).reshape(9, C)       # BN1 scale folded
        dwp.append(jnp.tile(dw_s, (1, W)) * tap_mask)                 # (9, WC) f32
        b1p.append(jnp.tile(p["b1"], W))                              # (WC,)  f32
        pw_s = p["pw"] * p["s2"][None, :]                             # BN2 scale folded
        pwp.append(jnp.kron(jnp.eye(W, dtype=jnp.float32), pw_s)
                   .astype(jnp.bfloat16))                             # (WC, WC) bf16
        b2p.append(jnp.tile(p["b2"], W))                              # (WC,)  f32
    return jnp.stack(dwp), jnp.stack(b1p), jnp.stack(pwp), jnp.stack(b2p)


# ----------------------------------------------------------------------------
# Wrapper: single pallas_call for the whole MiniBlock (stride = 1), NHWC native
# ----------------------------------------------------------------------------
def mini_block_forward(x_nhwc, layer_params):
    """x_nhwc: (B, H, W, C) bf16 (canonical cross-block layout). Returns same."""
    B, H, W, C = x_nhwc.shape
    L = len(layer_params)
    WC = W * C
    assert layer_params[0]["pw"].shape == (C, C), \
        "stride=1 MiniBlock needs in==out channels"
    # Lane-roll wrap-around correctness requires the packed row width to be
    # exactly W*C lanes (edge lanes zeroed in the packed depthwise weights);
    # for lane-dense stores it must also be a multiple of 128.
    assert WC % 128 == 0, "packed lane width W*C must be a multiple of 128"

    # Contiguous last-two-dim collapse: free (no HBM copy), unlike a transpose.
    x_packed = x_nhwc.reshape(B, H, WC).astype(jnp.bfloat16)
    dwp, b1p, pwp, b2p = pack_mini_block_params(layer_params, W)

    kernel = functools.partial(_mini_block_kernel, H=H, C=C, L=L)

    def build(weight_kwargs):
        return pl.pallas_call(
            kernel,
            out_shape=jax.ShapeDtypeStruct((B, H, WC), jnp.bfloat16),
            grid_spec=pltpu.PrefetchScalarGridSpec(
                num_scalar_prefetch=0,
                grid=(B,),
                in_specs=[
                    pl.BlockSpec((1, H, WC), lambda b: (b, 0, 0)),     # packed input
                    pl.BlockSpec((L, 9, WC), lambda b: (0, 0, 0), **weight_kwargs),
                    pl.BlockSpec((L, WC), lambda b: (0, 0), **weight_kwargs),
                    pl.BlockSpec((L, WC, WC), lambda b: (0, 0, 0), **weight_kwargs),
                    pl.BlockSpec((L, WC), lambda b: (0, 0), **weight_kwargs),
                ],
                out_specs=pl.BlockSpec((1, H, WC), lambda b: (b, 0, 0)),
                scratch_shapes=[pltpu.VMEM((H + 2, WC), jnp.float32)],
            ),
            compiler_params=pltpu.CompilerParams(
                dimension_semantics=("parallel",)),   # B=2 feeds both v7x TCs
        )

    try:
        # Grid-invariant weights/biases: request single buffering (no second
        # pipeline buffer, no redundant DMA scheduling across batch steps).
        out = build(dict(pipeline_mode=pl.Buffered(1)))(
            x_packed, dwp, b1p, pwp, b2p)
    except Exception:
        # Fallback for Pallas versions that reject single-buffered pipeline_mode.
        out = build({})(x_packed, dwp, b1p, pwp, b2p)

    return out.reshape(B, H, W, C)


# ----------------------------------------------------------------------------
# Deterministic parameter initialization (PyTorch layouts, then converted)
# ----------------------------------------------------------------------------
def init_sepconv_params(key, cin, cout):
    ks = jax.random.split(key, 10)
    dw_t = 0.2 * jax.random.normal(ks[0], (cin, 1, 3, 3), jnp.float32)     # depthwise
    pw_t = 0.2 * jax.random.normal(ks[1], (cout, cin, 1, 1), jnp.float32)  # 1x1
    g1 = 1.0 + 0.1 * jax.random.normal(ks[2], (cin,), jnp.float32)
    be1 = 0.1 * jax.random.normal(ks[3], (cin,), jnp.float32)
    m1 = 0.1 * jax.random.normal(ks[4], (cin,), jnp.float32)
    v1 = jax.random.uniform(ks[5], (cin,), jnp.float32, 0.5, 1.5)
    g2 = 1.0 + 0.1 * jax.random.normal(ks[6], (cout,), jnp.float32)
    be2 = 0.1 * jax.random.normal(ks[7], (cout,), jnp.float32)
    m2 = 0.1 * jax.random.normal(ks[8], (cout,), jnp.float32)
    v2 = jax.random.uniform(ks[9], (cout,), jnp.float32, 0.5, 1.5)

    s1 = g1 / jnp.sqrt(v1 + BN_EPS)
    b1 = be1 - m1 * s1
    s2 = g2 / jnp.sqrt(v2 + BN_EPS)
    b2 = be2 - m2 * s2
    return {
        "dw": jnp.transpose(dw_t[:, 0], (1, 2, 0)),        # (C,3,3) -> (3,3,C)
        "pw": jnp.transpose(pw_t[:, :, 0, 0], (1, 0)),     # (Cout,Cin) -> (Cin,Cout)
        "s1": s1, "b1": b1, "s2": s2, "b2": b2,
    }


# ----------------------------------------------------------------------------
# Pure-JAX reference (inference-mode BN) for correctness check, NHWC
# ----------------------------------------------------------------------------
def sepconv_ref(x_nhwc, p):
    C = x_nhwc.shape[-1]
    y = lax.conv_general_dilated(
        x_nhwc, p["dw"][:, :, None, :], window_strides=(1, 1),
        padding=((1, 1), (1, 1)),
        dimension_numbers=("NHWC", "HWIO", "NHWC"),
        feature_group_count=C)
    y = jnp.maximum(y * p["s1"] + p["b1"], 0.0)
    y = jnp.einsum("nhwc,cd->nhwd", y, p["pw"])
    y = jnp.maximum(y * p["s2"] + p["b2"], 0.0)
    return y


def mini_block_ref(x_nhwc, layer_params):
    h = x_nhwc
    for p in layer_params:
        h = sepconv_ref(h, p)
    return h + x_nhwc


# ----------------------------------------------------------------------------
if __name__ == "__main__":
    B, C, H, W = 2, 8, 16, 16          # in_channels == out_channels (stride=1); W*C = 128
    separable_conv_num = 2

    root = jax.random.PRNGKey(0)
    k_x, k_p = jax.random.split(root)
    # Canonical layout for the fused block is NHWC, carried bf16 in HBM across
    # blocks; no NCHW<->NHWC transpose on the hot path.
    x_f32 = jax.random.normal(k_x, (B, H, W, C), jnp.float32)
    x_bf16 = x_f32.astype(jnp.bfloat16)

    p_keys = jax.random.split(k_p, separable_conv_num)
    layer_params = [init_sepconv_params(p_keys[i], C, C)
                    for i in range(separable_conv_num)]

    out = jax.block_until_ready(mini_block_forward(x_bf16, layer_params))

    # Reference runs in f32 on the bf16-rounded input (isolates kernel error).
    ref = jax.block_until_ready(
        mini_block_ref(x_bf16.astype(jnp.float32), layer_params))

    assert out.shape == (B, H, W, C)
    out_f32 = out.astype(jnp.float32)
    max_err = jnp.max(jnp.abs(out_f32 - ref))
    # bf16 activations + two stacked bf16 MXU matmuls -> ~1e-2 level rounding.
    assert jnp.allclose(out_f32, ref, rtol=5e-2, atol=5e-2), \
        f"max abs err = {max_err}"

    print("KERNEL_OK")
</pallas_src>

<mosaic_0001>
module attributes {stable_mosaic.version = 11 : i64} {
  func.func @_mini_block_kernel(%arg0: i32, %arg1: memref<1x16x128xbf16, #tpu.memory_space<vmem>>, %arg2: memref<2x9x128xf32, #tpu.memory_space<vmem>>, %arg3: memref<2x128xf32, #tpu.memory_space<vmem>>, %arg4: memref<2x128x128xbf16, #tpu.memory_space<vmem>>, %arg5: memref<2x128xf32, #tpu.memory_space<vmem>>, %arg6: memref<1x16x128xbf16, #tpu.memory_space<vmem>>, %arg7: memref<18x128xf32, #tpu.memory_space<vmem>>) attributes {dimension_semantics = [#tpu.dimension_semantics<parallel>], iteration_bounds = array<i64: 2>, scalar_prefetch = 0 : i64, scratch_operands = 1 : i64, tpu.core_type = #tpu.core_type<tc>, window_params = [{transform_indices = @transform_0, window_bounds = array<i64: 1, 16, 128>}, {pipeline_mode = #tpu.pipeline_mode<synchronous>, transform_indices = @transform_1, window_bounds = array<i64: 2, 9, 128>}, {pipeline_mode = #tpu.pipeline_mode<synchronous>, transform_indices = @transform_2, window_bounds = array<i64: 2, 128>}, {pipeline_mode = #tpu.pipeline_mode<synchronous>, transform_indices = @transform_3, window_bounds = array<i64: 2, 128, 128>}, {pipeline_mode = #tpu.pipeline_mode<synchronous>, transform_indices = @transform_4, window_bounds = array<i64: 2, 128>}, {transform_indices = @transform_5, window_bounds = array<i64: 1, 16, 128>}]} {
    %c0 = arith.constant 0 : index
    %c0_0 = arith.constant 0 : index
    %c0_1 = arith.constant 0 : index
    %0 = vector.load %arg1[%c0, %c0_0, %c0_1] : memref<1x16x128xbf16, #tpu.memory_space<vmem>>, vector<1x16x128xbf16>
    %1 = vector.shape_cast %0 : vector<1x16x128xbf16> to vector<16x128xbf16>
    %2 = arith.extf %1 : vector<16x128xbf16> to vector<16x128xf32>
    %cst = arith.constant 0.000000e+00 : f32
    %3 = vector.broadcast %cst : f32 to vector<1x128xf32>
    %c0_2 = arith.constant 0 : index
    %c0_3 = arith.constant 0 : index
    %4 = vector.load %arg7[%c0_2, %c0_3] : memref<18x128xf32, #tpu.memory_space<vmem>>, vector<1x128xf32>
    tpu.vector_store %arg7[%c0_2, %c0_3], %3 {strides = array<i32>} : memref<18x128xf32, #tpu.memory_space<vmem>>, vector<1x128xf32>,
    %c17 = arith.constant 17 : index
    %c0_4 = arith.constant 0 : index
    %5 = vector.load %arg7[%c17, %c0_4] : memref<18x128xf32, #tpu.memory_space<vmem>>, vector<1x128xf32>
    tpu.vector_store %arg7[%c17, %c0_4], %3 {strides = array<i32>} : memref<18x128xf32, #tpu.memory_space<vmem>>, vector<1x128xf32>,
    %c1 = arith.constant 1 : index
    %c0_5 = arith.constant 0 : index
    %6 = vector.load %arg7[%c1, %c0_5] : memref<18x128xf32, #tpu.memory_space<vmem>>, vector<16x128xf32>
    tpu.vector_store %arg7[%c1, %c0_5], %2 {strides = array<i32>} : memref<18x128xf32, #tpu.memory_space<vmem>>, vector<16x128xf32>,
    %c0_6 = arith.constant 0 : index
    %c0_7 = arith.constant 0 : index
    %7 = vector.load %arg7[%c0_6, %c0_7] : memref<18x128xf32, #tpu.memory_space<vmem>>, vector<18x128xf32>
    %c8_i32 = arith.constant 8 : i32
    %8 = tpu.dynamic_rotate %7 by %c8_i32 dim 1 : vector<18x128xf32>, i32 -> vector<18x128xf32>
    %c120_i32 = arith.constant 120 : i32
    %9 = tpu.dynamic_rotate %7 by %c120_i32 dim 1 : vector<18x128xf32>, i32 -> vector<18x128xf32>
    %c0_8 = arith.constant 0 : index
    %c0_9 = arith.constant 0 : index
    %c0_10 = arith.constant 0 : index
    %10 = vector.load %arg2[%c0_8, %c0_9, %c0_10] : memref<2x9x128xf32, #tpu.memory_space<vmem>>, vector<1x9x128xf32>
    %11 = vector.shape_cast %10 : vector<1x9x128xf32> to vector<9x128xf32>
    %12 = vector.extract_strided_slice %8 {offsets = [0, 0], sizes = [16, 128], strides = [1, 1]} : vector<18x128xf32> to vector<16x128xf32>
    %13 = vector.extract_strided_slice %11 {offsets = [0, 0], sizes = [1, 128], strides = [1, 1]} : vector<9x128xf32> to vector<1x128xf32>
    %14 = vector.broadcast %13 : vector<1x128xf32> to vector<16x128xf32>
    %15 = arith.mulf %12, %14 : vector<16x128xf32>
    %16 = vector.extract_strided_slice %7 {offsets = [0, 0], sizes = [16, 128], strides = [1, 1]} : vector<18x128xf32> to vector<16x128xf32>
    %17 = vector.extract_strided_slice %11 {offsets = [1, 0], sizes = [1, 128], strides = [1, 1]} : vector<9x128xf32> to vector<1x128xf32>
    %18 = vector.broadcast %17 : vector<1x128xf32> to vector<16x128xf32>
    %19 = arith.mulf %16, %18 : vector<16x128xf32>
    %20 = arith.addf %15, %19 : vector<16x128xf32>
    %21 = vector.extract_strided_slice %9 {offsets = [0, 0], sizes = [16, 128], strides = [1, 1]} : vector<18x128xf32> to vector<16x128xf32>
    %22 = vector.extract_strided_slice %11 {offsets = [2, 0], sizes = [1, 128], strides = [1, 1]} : vector<9x128xf32> to vector<1x128xf32>
    %23 = vector.broadcast %22 : vector<1x128xf32> to vector<16x128xf32>
    %24 = arith.mulf %21, %23 : vector<16x128xf32>
    %25 = arith.addf %20, %24 : vector<16x128xf32>
    %26 = vector.extract_strided_slice %8 {offsets = [1, 0], sizes = [16, 128], strides = [1, 1]} : vector<18x128xf32> to vector<16x128xf32>
    %27 = vector.extract_strided_slice %11 {offsets = [3, 0], sizes = [1, 128], strides = [1, 1]} : vector<9x128xf32> to vector<1x128xf32>
    %28 = vector.broadcast %27 : vector<1x128xf32> to vector<16x128xf32>
    %29 = arith.mulf %26, %28 : vector<16x128xf32>
    %30 = vector.extract_strided_slice %7 {offsets = [1, 0], sizes = [16, 128], strides = [1, 1]} : vector<18x128xf32> to vector<16x128xf32>
    %31 = vector.extract_strided_slice %11 {offsets = [4, 0], sizes = [1, 128], strides = [1, 1]} : vector<9x128xf32> to vector<1x128xf32>
    %32 = vector.broadcast %31 : vector<1x128xf32> to vector<16x128xf32>
    %33 = arith.mulf %30, %32 : vector<16x128xf32>
    %34 = arith.addf %29, %33 : vector<16x128xf32>
    %35 = vector.extract_strided_slice %9 {offsets = [1, 0], sizes = [16, 128], strides = [1, 1]} : vector<18x128xf32> to vector<16x128xf32>
    %36 = vector.extract_strided_slice %11 {offsets = [5, 0], sizes = [1, 128], strides = [1, 1]} : vector<9x128xf32> to vector<1x128xf32>
    %37 = vector.broadcast %36 : vector<1x128xf32> to vector<16x128xf32>
    %38 = arith.mulf %35, %37 : vector<16x128xf32>
    %39 = arith.addf %34, %38 : vector<16x128xf32>
    %40 = vector.extract_strided_slice %8 {offsets = [2, 0], sizes = [16, 128], strides = [1, 1]} : vector<18x128xf32> to vector<16x128xf32>
    %41 = vector.extract_strided_slice %11 {offsets = [6, 0], sizes = [1, 128], strides = [1, 1]} : vector<9x128xf32> to vector<1x128xf32>
    %42 = vector.broadcast %41 : vector<1x128xf32> to vector<16x128xf32>
    %43 = arith.mulf %40, %42 : vector<16x128xf32>
    %44 = vector.extract_strided_slice %7 {offsets = [2, 0], sizes = [16, 128], strides = [1, 1]} : vector<18x128xf32> to vector<16x128xf32>
    %45 = vector.extract_strided_slice %11 {offsets = [7, 0], sizes = [1, 128], strides = [1, 1]} : vector<9x128xf32> to vector<1x128xf32>
    %46 = vector.broadcast %45 : vector<1x128xf32> to vector<16x128xf32>
    %47 = arith.mulf %44, %46 : vector<16x128xf32>
    %48 = arith.addf %43, %47 : vector<16x128xf32>
    %49 = vector.extract_strided_slice %9 {offsets = [2, 0], sizes = [16, 128], strides = [1, 1]} : vector<18x128xf32> to vector<16x128xf32>
    %50 = vector.extract_strided_slice %11 {offsets = [8, 0], sizes = [1, 128], strides = [1, 1]} : vector<9x128xf32> to vector<1x128xf32>
    %51 = vector.broadcast %50 : vector<1x128xf32> to vector<16x128xf32>
    %52 = arith.mulf %49, %51 : vector<16x128xf32>
    %53 = arith.addf %48, %52 : vector<16x128xf32>
    %54 = arith.addf %25, %39 : vector<16x128xf32>
    %55 = arith.addf %54, %53 : vector<16x128xf32>
    %c0_11 = arith.constant 0 : index
    %c0_12 = arith.constant 0 : index
    %56 = vector.load %arg3[%c0_11, %c0_12] : memref<2x128xf32, #tpu.memory_space<vmem>>, vector<1x128xf32>
    %57 = vector.shape_cast %56 : vector<1x128xf32> to vector<128xf32>
    %58 = vector.shape_cast %57 : vector<128xf32> to vector<1x128xf32>
    %59 = vector.broadcast %58 : vector<1x128xf32> to vector<16x128xf32>
    %60 = arith.addf %55, %59 : vector<16x128xf32>
    %cst_13 = arith.constant 0.000000e+00 : f32
    %61 = vector.broadcast %cst_13 : f32 to vector<16x128xf32>
    %62 = arith.maximumf %60, %61 : vector<16x128xf32>
    %63 = arith.truncf %62 : vector<16x128xf32> to vector<16x128xbf16>
    %c0_14 = arith.constant 0 : index
    %c0_15 = arith.constant 0 : index
    %c0_16 = arith.constant 0 : index
    %64 = vector.load %arg4[%c0_14, %c0_15, %c0_16] : memref<2x128x128xbf16, #tpu.memory_space<vmem>>, vector<1x128x128xbf16>
    %65 = vector.shape_cast %64 : vector<1x128x128xbf16> to vector<128x128xbf16>
    %cst_17 = arith.constant dense<0.000000e+00> : vector<16x128xf32>
    %66 = tpu.matmul %63, %65, %cst_17 {dimension_numbers = #tpu.dot_dimension_numbers<[1], [0], [0], [1], [0, 0, 1, 1], [], []>} : vector<16x128xbf16>, vector<128x128xbf16>, vector<16x128xf32> -> vector<16x128xf32>
    %c0_18 = arith.constant 0 : index
    %c0_19 = arith.constant 0 : index
    %67 = vector.load %arg5[%c0_18, %c0_19] : memref<2x128xf32, #tpu.memory_space<vmem>>, vector<1x128xf32>
    %68 = vector.shape_cast %67 : vector<1x128xf32> to vector<128xf32>
    %69 = vector.shape_cast %68 : vector<128xf32> to vector<1x128xf32>
    %70 = vector.broadcast %69 : vector<1x128xf32> to vector<16x128xf32>
    %71 = arith.addf %66, %70 : vector<16x128xf32>
    %cst_20 = arith.constant 0.000000e+00 : f32
    %72 = vector.broadcast %cst_20 : f32 to vector<16x128xf32>
    %73 = arith.maximumf %71, %72 : vector<16x128xf32>
    %c1_21 = arith.constant 1 : index
    %c0_22 = arith.constant 0 : index
    %74 = vector.load %arg7[%c1_21, %c0_22] : memref<18x128xf32, #tpu.memory_space<vmem>>, vector<16x128xf32>
    tpu.vector_store %arg7[%c1_21, %c0_22], %73 {strides = array<i32>} : memref<18x128xf32, #tpu.memory_space<vmem>>, vector<16x128xf32>,
    %c0_23 = arith.constant 0 : index
    %c0_24 = arith.constant 0 : index
    %75 = vector.load %arg7[%c0_23, %c0_24] : memref<18x128xf32, #tpu.memory_space<vmem>>, vector<18x128xf32>
    %c8_i32_25 = arith.constant 8 : i32
    %76 = tpu.dynamic_rotate %75 by %c8_i32_25 dim 1 : vector<18x128xf32>, i32 -> vector<18x128xf32>
    %c120_i32_26 = arith.constant 120 : i32
    %77 = tpu.dynamic_rotate %75 by %c120_i32_26 dim 1 : vector<18x128xf32>, i32 -> vector<18x128xf32>
    %c1_27 = arith.constant 1 : index
    %c0_28 = arith.constant 0 : index
    %c0_29 = arith.constant 0 : index
    %78 = vector.load %arg2[%c1_27, %c0_28, %c0_29] : memref<2x9x128xf32, #tpu.memory_space<vmem>>, vector<1x9x128xf32>
    %79 = vector.shape_cast %78 : vector<1x9x128xf32> to vector<9x128xf32>
    %80 = vector.extract_strided_slice %76 {offsets = [0, 0], sizes = [16, 128], strides = [1, 1]} : vector<18x128xf32> to vector<16x128xf32>
    %81 = vector.extract_strided_slice %79 {offsets = [0, 0], sizes = [1, 128], strides = [1, 1]} : vector<9x128xf32> to vector<1x128xf32>
    %82 = vector.broadcast %81 : vector<1x128xf32> to vector<16x128xf32>
    %83 = arith.mulf %80, %82 : vector<16x128xf32>
    %84 = vector.extract_strided_slice %75 {offsets = [0, 0], sizes = [16, 128], strides = [1, 1]} : vector<18x128xf32> to vector<16x128xf32>
    %85 = vector.extract_strided_slice %79 {offsets = [1, 0], sizes = [1, 128], strides = [1, 1]} : vector<9x128xf32> to vector<1x128xf32>
    %86 = vector.broadcast %85 : vector<1x128xf32> to vector<16x128xf32>
    %87 = arith.mulf %84, %86 : vector<16x128xf32>
    %88 = arith.addf %83, %87 : vector<16x128xf32>
    %89 = vector.extract_strided_slice %77 {offsets = [0, 0], sizes = [16, 128], strides = [1, 1]} : vector<18x128xf32> to vector<16x128xf32>
    %90 = vector.extract_strided_slice %79 {offsets = [2, 0], sizes = [1, 128], strides = [1, 1]} : vector<9x128xf32> to vector<1x128xf32>
    %91 = vector.broadcast %90 : vector<1x128xf32> to vector<16x128xf32>
    %92 = arith.mulf %89, %91 : vector<16x128xf32>
    %93 = arith.addf %88, %92 : vector<16x128xf32>
    %94 = vector.extract_strided_slice %76 {offsets = [1, 0], sizes = [16, 128], strides = [1, 1]} : vector<18x128xf32> to vector<16x128xf32>
    %95 = vector.extract_strided_slice %79 {offsets = [3, 0], sizes = [1, 128], strides = [1, 1]} : vector<9x128xf32> to vector<1x128xf32>
    %96 = vector.broadcast %95 : vector<1x128xf32> to vector<16x128xf32>
    %97 = arith.mulf %94, %96 : vector<16x128xf32>
    %98 = vector.extract_strided_slice %75 {offsets = [1, 0], sizes = [16, 128], strides = [1, 1]} : vector<18x128xf32> to vector<16x128xf32>
    %99 = vector.extract_strided_slice %79 {offsets = [4, 0], sizes = [1, 128], strides = [1, 1]} : vector<9x128xf32> to vector<1x128xf32>
    %100 = vector.broadcast %99 : vector<1x128xf32> to vector<16x128xf32>
    %101 = arith.mulf %98, %100 : vector<16x128xf32>
    %102 = arith.addf %97, %101 : vector<16x128xf32>
    %103 = vector.extract_strided_slice %77 {offsets = [1, 0], sizes = [16, 128], strides = [1, 1]} : vector<18x128xf32> to vector<16x128xf32>
    %104 = vector.extract_strided_slice %79 {offsets = [5, 0], sizes = [1, 128], strides = [1, 1]} : vector<9x128xf32> to vector<1x128xf32>
    %105 = vector.broadcast %104 : vector<1x128xf32> to vector<16x128xf32>
    %106 = arith.mulf %103, %105 : vector<16x128xf32>
    %107 = arith.addf %102, %106 : vector<16x128xf32>
    %108 = vector.extract_strided_slice %76 {offsets = [2, 0], sizes = [16, 128], strides = [1, 1]} : vector<18x128xf32> to vector<16x128xf32>
    %109 = vector.extract_strided_slice %79 {offsets = [6, 0], sizes = [1, 128], strides = [1, 1]} : vector<9x128xf32> to vector<1x128xf32>
    %110 = vector.broadcast %109 : vector<1x128xf32> to vector<16x128xf32>
    %111 = arith.mulf %108, %110 : vector<16x128xf32>
    %112 = vector.extract_strided_slice %75 {offsets = [2, 0], sizes = [16, 128], strides = [1, 1]} : vector<18x128xf32> to vector<16x128xf32>
    %113 = vector.extract_strided_slice %79 {offsets = [7, 0], sizes = [1, 128], strides = [1, 1]} : vector<9x128xf32> to vector<1x128xf32>
    %114 = vector.broadcast %113 : vector<1x128xf32> to vector<16x128xf32>
    %115 = arith.mulf %112, %114 : vector<16x128xf32>
    %116 = arith.addf %111, %115 : vector<16x128xf32>
    %117 = vector.extract_strided_slice %77 {offsets = [2, 0], sizes = [16, 128], strides = [1, 1]} : vector<18x128xf32> to vector<16x128xf32>
    %118 = vector.extract_strided_slice %79 {offsets = [8, 0], sizes = [1, 128], strides = [1, 1]} : vector<9x128xf32> to vector<1x128xf32>
    %119 = vector.broadcast %118 : vector<1x128xf32> to vector<16x128xf32>
    %120 = arith.mulf %117, %119 : vector<16x128xf32>
    %121 = arith.addf %116, %120 : vector<16x128xf32>
    %122 = arith.addf %93, %107 : vector<16x128xf32>
    %123 = arith.addf %122, %121 : vector<16x128xf32>
    %c1_30 = arith.constant 1 : index
    %c0_31 = arith.constant 0 : index
    %124 = vector.load %arg3[%c1_30, %c0_31] : memref<2x128xf32, #tpu.memory_space<vmem>>, vector<1x128xf32>
    %125 = vector.shape_cast %124 : vector<1x128xf32> to vector<128xf32>
    %126 = vector.shape_cast %125 : vector<128xf32> to vector<1x128xf32>
    %127 = vector.broadcast %126 : vector<1x128xf32> to vector<16x128xf32>
    %128 = arith.addf %123, %127 : vector<16x128xf32>
    %cst_32 = arith.constant 0.000000e+00 : f32
    %129 = vector.broadcast %cst_32 : f32 to vector<16x128xf32>
    %130 = arith.maximumf %128, %129 : vector<16x128xf32>
    %131 = arith.truncf %130 : vector<16x128xf32> to vector<16x128xbf16>
    %c1_33 = arith.constant 1 : index
    %c0_34 = arith.constant 0 : index
    %c0_35 = arith.constant 0 : index
    %132 = vector.load %arg4[%c1_33, %c0_34, %c0_35] : memref<2x128x128xbf16, #tpu.memory_space<vmem>>, vector<1x128x128xbf16>
    %133 = vector.shape_cast %132 : vector<1x128x128xbf16> to vector<128x128xbf16>
    %cst_36 = arith.constant dense<0.000000e+00> : vector<16x128xf32>
    %134 = tpu.matmul %131, %133, %cst_36 {dimension_numbers = #tpu.dot_dimension_numbers<[1], [0], [0], [1], [0, 0, 1, 1], [], []>} : vector<16x128xbf16>, vector<128x128xbf16>, vector<16x128xf32> -> vector<16x128xf32>
    %c1_37 = arith.constant 1 : index
    %c0_38 = arith.constant 0 : index
    %135 = vector.load %arg5[%c1_37, %c0_38] : memref<2x128xf32, #tpu.memory_space<vmem>>, vector<1x128xf32>
    %136 = vector.shape_cast %135 : vector<1x128xf32> to vector<128xf32>
    %137 = vector.shape_cast %136 : vector<128xf32> to vector<1x128xf32>
    %138 = vector.broadcast %137 : vector<1x128xf32> to vector<16x128xf32>
    %139 = arith.addf %134, %138 : vector<16x128xf32>
    %cst_39 = arith.constant 0.000000e+00 : f32
    %140 = vector.broadcast %cst_39 : f32 to vector<16x128xf32>
    %141 = arith.maximumf %139, %140 : vector<16x128xf32>
    %142 = arith.addf %141, %2 : vector<16x128xf32>
    %143 = arith.truncf %142 : vector<16x128xf32> to vector<16x128xbf16>
    %c0_40 = arith.constant 0 : index
    %c0_41 = arith.constant 0 : index
    %c0_42 = arith.constant 0 : index
    %144 = vector.load %arg6[%c0_40, %c0_41, %c0_42] : memref<1x16x128xbf16, #tpu.memory_space<vmem>>, vector<1x16x128xbf16>
    %145 = vector.shape_cast %144 : vector<1x16x128xbf16> to vector<16x128xbf16>
    %146 = vector.shape_cast %143 : vector<16x128xbf16> to vector<1x16x128xbf16>
    tpu.vector_store %arg6[%c0_40, %c0_41, %c0_42], %146 {strides = array<i32>} : memref<1x16x128xbf16, #tpu.memory_space<vmem>>, vector<1x16x128xbf16>,
    return
  }
  func.func @transform_0(%arg0: i32) -> (i32, i32, i32) {
    %c0_i32 = arith.constant 0 : i32
    %c0_i32_0 = arith.constant 0 : i32
    %c0_i32_1 = arith.constant 0 : i32
    return %arg0, %c0_i32, %c0_i32_0 : i32, i32, i32
  }
  func.func @transform_1(%arg0: i32) -> (i32, i32, i32) {
    %c0_i32 = arith.constant 0 : i32
    %c0_i32_0 = arith.constant 0 : i32
    %c0_i32_1 = arith.constant 0 : i32
    %c0_i32_2 = arith.constant 0 : i32
    return %c0_i32, %c0_i32_0, %c0_i32_1 : i32, i32, i32
  }
  func.func @transform_2(%arg0: i32) -> (i32, i32) {
    %c0_i32 = arith.constant 0 : i32
    %c0_i32_0 = arith.constant 0 : i32
    %c0_i32_1 = arith.constant 0 : i32
    return %c0_i32, %c0_i32_0 : i32, i32
  }
  func.func @transform_3(%arg0: i32) -> (i32, i32, i32) {
    %c0_i32 = arith.constant 0 : i32
    %c0_i32_0 = arith.constant 0 : i32
    %c0_i32_1 = arith.constant 0 : i32
    %c0_i32_2 = arith.constant 0 : i32
    return %c0_i32, %c0_i32_0, %c0_i32_1 : i32, i32, i32
  }
  func.func @transform_4(%arg0: i32) -> (i32, i32) {
    %c0_i32 = arith.constant 0 : i32
    %c0_i32_0 = arith.constant 0 : i32
    %c0_i32_1 = arith.constant 0 : i32
    return %c0_i32, %c0_i32_0 : i32, i32
  }
  func.func @transform_5(%arg0: i32) -> (i32, i32, i32) {
    %c0_i32 = arith.constant 0 : i32
    %c0_i32_0 = arith.constant 0 : i32
    %c0_i32_1 = arith.constant 0 : i32
    return %arg0, %c0_i32, %c0_i32_0 : i32, i32, i32
  }
}

module attributes {stable_mosaic.version = 11 : i64} {
  func.func @_mini_block_kernel(%arg0: i32, %arg1: memref<1x16x128xbf16, #tpu.memory_space<vmem>>, %arg2: memref<2x9x128xf32, #tpu.memory_space<vmem>>, %arg3: memref<2x128xf32, #tpu.memory_space<vmem>>, %arg4: memref<2x128x128xbf16, #tpu.memory_space<vmem>>, %arg5: memref<2x128xf32, #tpu.memory_space<vmem>>, %arg6: memref<1x16x128xbf16, #tpu.memory_space<vmem>>, %arg7: memref<18x128xf32, #tpu.memory_space<vmem>>) attributes {dimension_semantics = [#tpu.dimension_semantics<parallel>], iteration_bounds = array<i64: 2>, scalar_prefetch = 0 : i64, scratch_operands = 1 : i64, tpu.core_type = #tpu.core_type<tc>, window_params = [{transform_indices = @transform_0, window_bounds = array<i64: 1, 16, 128>}, {pipeline_mode = #tpu.pipeline_mode<synchronous>, transform_indices = @transform_1, window_bounds = array<i64: 2, 9, 128>}, {pipeline_mode = #tpu.pipeline_mode<synchronous>, transform_indices = @transform_2, window_bounds = array<i64: 2, 128>}, {pipeline_mode = #tpu.pipeline_mode<synchronous>, transform_indices = @transform_3, window_bounds = array<i64: 2, 128, 128>}, {pipeline_mode = #tpu.pipeline_mode<synchronous>, transform_indices = @transform_4, window_bounds = array<i64: 2, 128>}, {transform_indices = @transform_5, window_bounds = array<i64: 1, 16, 128>}]} {
    %c0 = arith.constant 0 : index
    %c0_0 = arith.constant 0 : index
    %c0_1 = arith.constant 0 : index
    %0 = vector.load %arg1[%c0, %c0_0, %c0_1] : memref<1x16x128xbf16, #tpu.memory_space<vmem>>, vector<1x16x128xbf16>
    %1 = vector.shape_cast %0 : vector<1x16x128xbf16> to vector<16x128xbf16>
    %2 = arith.extf %1 : vector<16x128xbf16> to vector<16x128xf32>
    %cst = arith.constant 0.000000e+00 : f32
    %3 = vector.broadcast %cst : f32 to vector<1x128xf32>
    %c0_2 = arith.constant 0 : index
    %c0_3 = arith.constant 0 : index
    %4 = vector.load %arg7[%c0_2, %c0_3] : memref<18x128xf32, #tpu.memory_space<vmem>>, vector<1x128xf32>
    tpu.vector_store %arg7[%c0_2, %c0_3], %3 {strides = array<i32>} : memref<18x128xf32, #tpu.memory_space<vmem>>, vector<1x128xf32>,
    %c17 = arith.constant 17 : index
    %c0_4 = arith.constant 0 : index
    %5 = vector.load %arg7[%c17, %c0_4] : memref<18x128xf32, #tpu.memory_space<vmem>>, vector<1x128xf32>
    tpu.vector_store %arg7[%c17, %c0_4], %3 {strides = array<i32>} : memref<18x128xf32, #tpu.memory_space<vmem>>, vector<1x128xf32>,
    %c1 = arith.constant 1 : index
    %c0_5 = arith.constant 0 : index
    %6 = vector.load %arg7[%c1, %c0_5] : memref<18x128xf32, #tpu.memory_space<vmem>>, vector<16x128xf32>
    tpu.vector_store %arg7[%c1, %c0_5], %2 {strides = array<i32>} : memref<18x128xf32, #tpu.memory_space<vmem>>, vector<16x128xf32>,
    %c0_6 = arith.constant 0 : index
    %c0_7 = arith.constant 0 : index
    %7 = vector.load %arg7[%c0_6, %c0_7] : memref<18x128xf32, #tpu.memory_space<vmem>>, vector<18x128xf32>
    %c8_i32 = arith.constant 8 : i32
    %8 = tpu.dynamic_rotate %7 by %c8_i32 dim 1 : vector<18x128xf32>, i32 -> vector<18x128xf32>
    %c120_i32 = arith.constant 120 : i32
    %9 = tpu.dynamic_rotate %7 by %c120_i32 dim 1 : vector<18x128xf32>, i32 -> vector<18x128xf32>
    %c0_8 = arith.constant 0 : index
    %c0_9 = arith.constant 0 : index
    %c0_10 = arith.constant 0 : index
    %10 = vector.load %arg2[%c0_8, %c0_9, %c0_10] : memref<2x9x128xf32, #tpu.memory_space<vmem>>, vector<1x9x128xf32>
    %11 = vector.shape_cast %10 : vector<1x9x128xf32> to vector<9x128xf32>
    %12 = vector.extract_strided_slice %8 {offsets = [0, 0], sizes = [16, 128], strides = [1, 1]} : vector<18x128xf32> to vector<16x128xf32>
    %13 = vector.extract_strided_slice %11 {offsets = [0, 0], sizes = [1, 128], strides = [1, 1]} : vector<9x128xf32> to vector<1x128xf32>
    %14 = vector.broadcast %13 : vector<1x128xf32> to vector<16x128xf32>
    %15 = arith.mulf %12, %14 : vector<16x128xf32>
    %16 = vector.extract_strided_slice %7 {offsets = [0, 0], sizes = [16, 128], strides = [1, 1]} : vector<18x128xf32> to vector<16x128xf32>
    %17 = vector.extract_strided_slice %11 {offsets = [1, 0], sizes = [1, 128], strides = [1, 1]} : vector<9x128xf32> to vector<1x128xf32>
    %18 = vector.broadcast %17 : vector<1x128xf32> to vector<16x128xf32>
    %19 = arith.mulf %16, %18 : vector<16x128xf32>
    %20 = arith.addf %15, %19 : vector<16x128xf32>
    %21 = vector.extract_strided_slice %9 {offsets = [0, 0], sizes = [16, 128], strides = [1, 1]} : vector<18x128xf32> to vector<16x128xf32>
    %22 = vector.extract_strided_slice %11 {offsets = [2, 0], sizes = [1, 128], strides = [1, 1]} : vector<9x128xf32> to vector<1x128xf32>
    %23 = vector.broadcast %22 : vector<1x128xf32> to vector<16x128xf32>
    %24 = arith.mulf %21, %23 : vector<16x128xf32>
    %25 = arith.addf %20, %24 : vector<16x128xf32>
    %26 = vector.extract_strided_slice %8 {offsets = [1, 0], sizes = [16, 128], strides = [1, 1]} : vector<18x128xf32> to vector<16x128xf32>
    %27 = vector.extract_strided_slice %11 {offsets = [3, 0], sizes = [1, 128], strides = [1, 1]} : vector<9x128xf32> to vector<1x128xf32>
    %28 = vector.broadcast %27 : vector<1x128xf32> to vector<16x128xf32>
    %29 = arith.mulf %26, %28 : vector<16x128xf32>
    %30 = vector.extract_strided_slice %7 {offsets = [1, 0], sizes = [16, 128], strides = [1, 1]} : vector<18x128xf32> to vector<16x128xf32>
    %31 = vector.extract_strided_slice %11 {offsets = [4, 0], sizes = [1, 128], strides = [1, 1]} : vector<9x128xf32> to vector<1x128xf32>
    %32 = vector.broadcast %31 : vector<1x128xf32> to vector<16x128xf32>
    %33 = arith.mulf %30, %32 : vector<16x128xf32>
    %34 = arith.addf %29, %33 : vector<16x128xf32>
    %35 = vector.extract_strided_slice %9 {offsets = [1, 0], sizes = [16, 128], strides = [1, 1]} : vector<18x128xf32> to vector<16x128xf32>
    %36 = vector.extract_strided_slice %11 {offsets = [5, 0], sizes = [1, 128], strides = [1, 1]} : vector<9x128xf32> to vector<1x128xf32>
    %37 = vector.broadcast %36 : vector<1x128xf32> to vector<16x128xf32>
    %38 = arith.mulf %35, %37 : vector<16x128xf32>
    %39 = arith.addf %34, %38 : vector<16x128xf32>
    %40 = vector.extract_strided_slice %8 {offsets = [2, 0], sizes = [16, 128], strides = [1, 1]} : vector<18x128xf32> to vector<16x128xf32>
    %41 = vector.extract_strided_slice %11 {offsets = [6, 0], sizes = [1, 128], strides = [1, 1]} : vector<9x128xf32> to vector<1x128xf32>
    %42 = vector.broadcast %41 : vector<1x128xf32> to vector<16x128xf32>
    %43 = arith.mulf %40, %42 : vector<16x128xf32>
    %44 = vector.extract_strided_slice %7 {offsets = [2, 0], sizes = [16, 128], strides = [1, 1]} : vector<18x128xf32> to vector<16x128xf32>
    %45 = vector.extract_strided_slice %11 {offsets = [7, 0], sizes = [1, 128], strides = [1, 1]} : vector<9x128xf32> to vector<1x128xf32>
    %46 = vector.broadcast %45 : vector<1x128xf32> to vector<16x128xf32>
    %47 = arith.mulf %44, %46 : vector<16x128xf32>
    %48 = arith.addf %43, %47 : vector<16x128xf32>
    %49 = vector.extract_strided_slice %9 {offsets = [2, 0], sizes = [16, 128], strides = [1, 1]} : vector<18x128xf32> to vector<16x128xf32>
    %50 = vector.extract_strided_slice %11 {offsets = [8, 0], sizes = [1, 128], strides = [1, 1]} : vector<9x128xf32> to vector<1x128xf32>
    %51 = vector.broadcast %50 : vector<1x128xf32> to vector<16x128xf32>
    %52 = arith.mulf %49, %51 : vector<16x128xf32>
    %53 = arith.addf %48, %52 : vector<16x128xf32>
    %54 = arith.addf %25, %39 : vector<16x128xf32>
    %55 = arith.addf %54, %53 : vector<16x128xf32>
    %c0_11 = arith.constant 0 : index
    %c0_12 = arith.constant 0 : index
    %56 = vector.load %arg3[%c0_11, %c0_12] : memref<2x128xf32, #tpu.memory_space<vmem>>, vector<1x128xf32>
    %57 = vector.shape_cast %56 : vector<1x128xf32> to vector<128xf32>
    %58 = vector.shape_cast %57 : vector<128xf32> to vector<1x128xf32>
    %59 = vector.broadcast %58 : vector<1x128xf32> to vector<16x128xf32>
    %60 = arith.addf %55, %59 : vector<16x128xf32>
    %cst_13 = arith.constant 0.000000e+00 : f32
    %61 = vector.broadcast %cst_13 : f32 to vector<16x128xf32>
    %62 = arith.maximumf %60, %61 : vector<16x128xf32>
    %63 = arith.truncf %62 : vector<16x128xf32> to vector<16x128xbf16>
    %c0_14 = arith.constant 0 : index
    %c0_15 = arith.constant 0 : index
    %c0_16 = arith.constant 0 : index
    %64 = vector.load %arg4[%c0_14, %c0_15, %c0_16] : memref<2x128x128xbf16, #tpu.memory_space<vmem>>, vector<1x128x128xbf16>
    %65 = vector.shape_cast %64 : vector<1x128x128xbf16> to vector<128x128xbf16>
    %cst_17 = arith.constant dense<0.000000e+00> : vector<16x128xf32>
    %66 = tpu.matmul %63, %65, %cst_17 {dimension_numbers = #tpu.dot_dimension_numbers<[1], [0], [0], [1], [0, 0, 1, 1], [], []>} : vector<16x128xbf16>, vector<128x128xbf16>, vector<16x128xf32> -> vector<16x128xf32>
    %c0_18 = arith.constant 0 : index
    %c0_19 = arith.constant 0 : index
    %67 = vector.load %arg5[%c0_18, %c0_19] : memref<2x128xf32, #tpu.memory_space<vmem>>, vector<1x128xf32>
    %68 = vector.shape_cast %67 : vector<1x128xf32> to vector<128xf32>
    %69 = vector.shape_cast %68 : vector<128xf32> to vector<1x128xf32>
    %70 = vector.broadcast %69 : vector<1x128xf32> to vector<16x128xf32>
    %71 = arith.addf %66, %70 : vector<16x128xf32>
    %cst_20 = arith.constant 0.000000e+00 : f32
    %72 = vector.broadcast %cst_20 : f32 to vector<16x128xf32>
    %73 = arith.maximumf %71, %72 : vector<16x128xf32>
    %c1_21 = arith.constant 1 : index
    %c0_22 = arith.constant 0 : index
    %74 = vector.load %arg7[%c1_21, %c0_22] : memref<18x128xf32, #tpu.memory_space<vmem>>, vector<16x128xf32>
    tpu.vector_store %arg7[%c1_21, %c0_22], %73 {strides = array<i32>} : memref<18x128xf32, #tpu.memory_space<vmem>>, vector<16x128xf32>,
    %c0_23 = arith.constant 0 : index
    %c0_24 = arith.constant 0 : index
    %75 = vector.load %arg7[%c0_23, %c0_24] : memref<18x128xf32, #tpu.memory_space<vmem>>, vector<18x128xf32>
    %c8_i32_25 = arith.constant 8 : i32
    %76 = tpu.dynamic_rotate %75 by %c8_i32_25 dim 1 : vector<18x128xf32>, i32 -> vector<18x128xf32>
    %c120_i32_26 = arith.constant 120 : i32
    %77 = tpu.dynamic_rotate %75 by %c120_i32_26 dim 1 : vector<18x128xf32>, i32 -> vector<18x128xf32>
    %c1_27 = arith.constant 1 : index
    %c0_28 = arith.constant 0 : index
    %c0_29 = arith.constant 0 : index
    %78 = vector.load %arg2[%c1_27, %c0_28, %c0_29] : memref<2x9x128xf32, #tpu.memory_space<vmem>>, vector<1x9x128xf32>
    %79 = vector.shape_cast %78 : vector<1x9x128xf32> to vector<9x128xf32>
    %80 = vector.extract_strided_slice %76 {offsets = [0, 0], sizes = [16, 128], strides = [1, 1]} : vector<18x128xf32> to vector<16x128xf32>
    %81 = vector.extract_strided_slice %79 {offsets = [0, 0], sizes = [1, 128], strides = [1, 1]} : vector<9x128xf32> to vector<1x128xf32>
    %82 = vector.broadcast %81 : vector<1x128xf32> to vector<16x128xf32>
    %83 = arith.mulf %80, %82 : vector<16x128xf32>
    %84 = vector.extract_strided_slice %75 {offsets = [0, 0], sizes = [16, 128], strides = [1, 1]} : vector<18x128xf32> to vector<16x128xf32>
    %85 = vector.extract_strided_slice %79 {offsets = [1, 0], sizes = [1, 128], strides = [1, 1]} : vector<9x128xf32> to vector<1x128xf32>
    %86 = vector.broadcast %85 : vector<1x128xf32> to vector<16x128xf32>
    %87 = arith.mulf %84, %86 : vector<16x128xf32>
    %88 = arith.addf %83, %87 : vector<16x128xf32>
    %89 = vector.extract_strided_slice %77 {offsets = [0, 0], sizes = [16, 128], strides = [1, 1]} : vector<18x128xf32> to vector<16x128xf32>
    %90 = vector.extract_strided_slice %79 {offsets = [2, 0], sizes = [1, 128], strides = [1, 1]} : vector<9x128xf32> to vector<1x128xf32>
    %91 = vector.broadcast %90 : vector<1x128xf32> to vector<16x128xf32>
    %92 = arith.mulf %89, %91 : vector<16x128xf32>
    %93 = arith.addf %88, %92 : vector<16x128xf32>
    %94 = vector.extract_strided_slice %76 {offsets = [1, 0], sizes = [16, 128], strides = [1, 1]} : vector<18x128xf32> to vector<16x128xf32>
    %95 = vector.extract_strided_slice %79 {offsets = [3, 0], sizes = [1, 128], strides = [1, 1]} : vector<9x128xf32> to vector<1x128xf32>
    %96 = vector.broadcast %95 : vector<1x128xf32> to vector<16x128xf32>
    %97 = arith.mulf %94, %96 : vector<16x128xf32>
    %98 = vector.extract_strided_slice %75 {offsets = [1, 0], sizes = [16, 128], strides = [1, 1]} : vector<18x128xf32> to vector<16x128xf32>
    %99 = vector.extract_strided_slice %79 {offsets = [4, 0], sizes = [1, 128], strides = [1, 1]} : vector<9x128xf32> to vector<1x128xf32>
    %100 = vector.broadcast %99 : vector<1x128xf32> to vector<16x128xf32>
    %101 = arith.mulf %98, %100 : vector<16x128xf32>
    %102 = arith.addf %97, %101 : vector<16x128xf32>
    %103 = vector.extract_strided_slice %77 {offsets = [1, 0], sizes = [16, 128], strides = [1, 1]} : vector<18x128xf32> to vector<16x128xf32>
    %104 = vector.extract_strided_slice %79 {offsets = [5, 0], sizes = [1, 128], strides = [1, 1]} : vector<9x128xf32> to vector<1x128xf32>
    %105 = vector.broadcast %104 : vector<1x128xf32> to vector<16x128xf32>
    %106 = arith.mulf %103, %105 : vector<16x128xf32>
    %107 = arith.addf %102, %106 : vector<16x128xf32>
    %108 = vector.extract_strided_slice %76 {offsets = [2, 0], sizes = [16, 128], strides = [1, 1]} : vector<18x128xf32> to vector<16x128xf32>
    %109 = vector.extract_strided_slice %79 {offsets = [6, 0], sizes = [1, 128], strides = [1, 1]} : vector<9x128xf32> to vector<1x128xf32>
    %110 = vector.broadcast %109 : vector<1x128xf32> to vector<16x128xf32>
    %111 = arith.mulf %108, %110 : vector<16x128xf32>
    %112 = vector.extract_strided_slice %75 {offsets = [2, 0], sizes = [16, 128], strides = [1, 1]} : vector<18x128xf32> to vector<16x128xf32>
    %113 = vector.extract_strided_slice %79 {offsets = [7, 0], sizes = [1, 128], strides = [1, 1]} : vector<9x128xf32> to vector<1x128xf32>
    %114 = vector.broadcast %113 : vector<1x128xf32> to vector<16x128xf32>
    %115 = arith.mulf %112, %114 : vector<16x128xf32>
    %116 = arith.addf %111, %115 : vector<16x128xf32>
    %117 = vector.extract_strided_slice %77 {offsets = [2, 0], sizes = [16, 128], strides = [1, 1]} : vector<18x128xf32> to vector<16x128xf32>
    %118 = vector.extract_strided_slice %79 {offsets = [8, 0], sizes = [1, 128], strides = [1, 1]} : vector<9x128xf32> to vector<1x128xf32>
    %119 = vector.broadcast %118 : vector<1x128xf32> to vector<16x128xf32>
    %120 = arith.mulf %117, %119 : vector<16x128xf32>
    %121 = arith.addf %116, %120 : vector<16x128xf32>
    %122 = arith.addf %93, %107 : vector<16x128xf32>
    %123 = arith.addf %122, %121 : vector<16x128xf32>
    %c1_30 = arith.constant 1 : index
    %c0_31 = arith.constant 0 : index
    %124 = vector.load %arg3[%c1_30, %c0_31] : memref<2x128xf32, #tpu.memory_space<vmem>>, vector<1x128xf32>
    %125 = vector.shape_cast %124 : vector<1x128xf32> to vector<128xf32>
    %126 = vector.shape_cast %125 : vector<128xf32> to vector<1x128xf32>
    %127 = vector.broadcast %126 : vector<1x128xf32> to vector<16x128xf32>
    %128 = arith.addf %123, %127 : vector<16x128xf32>
    %cst_32 = arith.constant 0.000000e+00 : f32
    %129 = vector.broadcast %cst_32 : f32 to vector<16x128xf32>
    %130 = arith.maximumf %128, %129 : vector<16x128xf32>
    %131 = arith.truncf %130 : vector<16x128xf32> to vector<16x128xbf16>
    %c1_33 = arith.constant 1 : index
    %c0_34 = arith.constant 0 : index
    %c0_35 = arith.constant 0 : index
    %132 = vector.load %arg4[%c1_33, %c0_34, %c0_35] : memref<2x128x128xbf16, #tpu.memory_space<vmem>>, vector<1x128x128xbf16>
    %133 = vector.shape_cast %132 : vector<1x128x128xbf16> to vector<128x128xbf16>
    %cst_36 = arith.constant dense<0.000000e+00> : vector<16x128xf32>
    %134 = tpu.matmul %131, %133, %cst_36 {dimension_numbers = #tpu.dot_dimension_numbers<[1], [0], [0], [1], [0, 0, 1, 1], [], []>} : vector<16x128xbf16>, vector<128x128xbf16>, vector<16x128xf32> -> vector<16x128xf32>
    %c1_37 = arith.constant 1 : index
    %c0_38 = arith.constant 0 : index
    %135 = vector.load %arg5[%c1_37, %c0_38] : memref<2x128xf32, #tpu.memory_space<vmem>>, vector<1x128xf32>
    %136 = vector.shape_cast %135 : vector<1x128xf32> to vector<128xf32>
    %137 = vector.shape_cast %136 : vector<128xf32> to vector<1x128xf32>
    %138 = vector.broadcast %137 : vector<1x128xf32> to vector<16x128xf32>
    %139 = arith.addf %134, %138 : vector<16x128xf32>
    %cst_39 = arith.constant 0.000000e+00 : f32
    %140 = vector.broadcast %cst_39 : f32 to vector<16x128xf32>
    %141 = arith.maximumf %139, %140 : vector<16x128xf32>
    %142 = arith.addf %141, %2 : vector<16x128xf32>
    %143 = arith.truncf %142 : vector<16x128xf32> to vector<16x128xbf16>
    %c0_40 = arith.constant 0 : index
    %c0_41 = arith.constant 0 : index
    %c0_42 = arith.constant 0 : index
    %144 = vector.load %arg6[%c0_40, %c0_41, %c0_42] : memref<1x16x128xbf16, #tpu.memory_space<vmem>>, vector<1x16x128xbf16>
    %145 = vector.shape_cast %144 : vector<1x16x128xbf16> to vector<16x128xbf16>
    %146 = vector.shape_cast %143 : vector<16x128xbf16> to vector<1x16x128xbf16>
    tpu.vector_store %arg6[%c0_40, %c0_41, %c0_42], %146 {strides = array<i32>} : memref<1x16x128xbf16, #tpu.memory_space<vmem>>, vector<1x16x128xbf16>,
    return
  }
  func.func @transform_0(%arg0: i32) -> (i32, i32, i32) {
    %c0_i32 = arith.constant 0 : i32
    %c0_i32_0 = arith.constant 0 : i32
    %c0_i32_1 = arith.constant 0 : i32
    return %arg0, %c0_i32, %c0_i32_0 : i32, i32, i32
  }
  func.func @transform_1(%arg0: i32) -> (i32, i32, i32) {
    %c0_i32 = arith.constant 0 : i32
    %c0_i32_0 = arith.constant 0 : i32
    %c0_i32_1 = arith.constant 0 : i32
    %c0_i32_2 = arith.constant 0 : i32
    return %c0_i32, %c0_i32_0, %c0_i32_1 : i32, i32, i32
  }
  func.func @transform_2(%arg0: i32) -> (i32, i32) {
    %c0_i32 = arith.constant 0 : i32
    %c0_i32_0 = arith.constant 0 : i32
    %c0_i32_1 = arith.constant 0 : i32
    return %c0_i32, %c0_i32_0 : i32, i32
  }
  func.func @transform_3(%arg0: i32) -> (i32, i32, i32) {
    %c0_i32 = arith.constant 0 : i32
    %c0_i32_0 = arith.constant 0 : i32
    %c0_i32_1 = arith.constant 0 : i32
    %c0_i32_2 = arith.constant 0 : i32
    return %c0_i32, %c0_i32_0, %c0_i32_1 : i32, i32, i32
  }
  func.func @transform_4(%arg0: i32) -> (i32, i32) {
    %c0_i32 = arith.constant 0 : i32
    %c0_i32_0 = arith.constant 0 : i32
    %c0_i32_1 = arith.constant 0 : i32
    return %c0_i32, %c0_i32_0 : i32, i32
  }
  func.func @transform_5(%arg0: i32) -> (i32, i32, i32) {
    %c0_i32 = arith.constant 0 : i32
    %c0_i32_0 = arith.constant 0 : i32
    %c0_i32_1 = arith.constant 0 : i32
    return %arg0, %c0_i32, %c0_i32_0 : i32, i32, i32
  }
}

</mosaic_0001>

<bundles_post_ra>
// kernel: tpu_custom_call.1
= control target key start
LH: loop header
LB: loop body
LE: loop exit
PB: predicated region body
PF: predicated region fallthrough
CT: control target
= control target key end

     0   :  { %10 = vsyncpa [#allocation4], 0  ;;  %s1422_s0 = inlined_call_operand.vmem [shape: bf16[2,16,128], index: 0, kind: input, shape index: {}]   ;;  %s1423_s1 = inlined_call_operand.vmem [shape: f32[2,9,128], index: 1, kind: input, shape index: {}]   ;;  %s1424_s2 = inlined_call_operand.vmem [shape: f32[2,128], index: 2, kind: input, shape index: {}]   ;;  %s1425_s3 = inlined_call_operand.hbm [shape: bf16[2,128,128], index: 3, kind: input, shape index: {}]   ;;  %s1426_s4 = inlined_call_operand.vmem [shape: f32[2,128], index: 4, kind: input, shape index: {}]   ;;  %s1427_s5 = inlined_call_operand.hbm [shape: bf16[2,16,128], index: 5, kind: output, shape index: {}]  }
   0x1   :  { %11 = vsyncpa [#allocation5], 0 }
   0x2   :  { %13 = vsyncpa [#allocation5 + $0x1], 0  ;;  %s1152_s18 = smov 0   ;;  %s1154_s19 = smov 0  }
   0x3   :  { %s1156_s20 = smov 0   ;;  %s1158_s21 = smov 0  }
   0x4 LB: > { %s1173_s22 = sadd.s32 4294967295, %s1110_s21   ;;  %s831_s23 = sadd.s32 4294967294, %s1110_s21   ;;  %s1110_s21 = sphi %s1158_s21, %s1443_s21   ;;  %s1106_s20 = sphi %s1156_s20, %s1442_s20   ;;  %s1102_s19 = sphi %s1154_s19, %s1441_s19   ;;  %s1098_s18 = sphi %s1152_s18, %s1440_s18  }
   0x5   : > { %s1177_s24 = sadd.s32 1, %s1110_s21   ;;  %s136_s25 = sadd.s32 1, %s1106_s20 }
   0x6   : > { %s133_s26 = ssub.s32 %s1110_s21, %s1177_s24  ;;  %p146_p0 = scmp.ne.s32.totalorder %s1106_s20, %s1102_s19 }
   0x7   : > { %p134_p1 = scmp.eq.s32.totalorder %s133_s26, 0  ;;  %p147_p2 = scmp.eq.s32.totalorder %s1173_s22, 1 }
   0x8   : > { %p152_p3 = scmp.ne.s32.totalorder %s1102_s19, %s1098_s18  ;;  %p153_p4 = scmp.eq.s32.totalorder %s831_s23, 1 }
   0x9   : > { %s1188_s27 = scalar_select %p134_p1, %s1106_s20, %s136_s25  }
   0xa   : > { %p1190_p5 = por %p147_p2, %p146_p0  ;;  %p1194_p6 = por %p153_p4, %p152_p3 }
   0xb   : > { %p832_p7 = scmp.ge.s32.totalorder %s1110_s21, 1  ;;  %p160_p8 = scmp.lt.s32.totalorder %s1110_s21, 3 }
   0xc   : > { %s1431_s28 = scalar_select %p1190_p5, 1, 0 }
   0xd   : > { %s1432_s29 = scalar_select %p1194_p6, 1, 0 }
   0xe   : > { %p1428_p9 = scmp.eq.s32.totalorder %s1173_s22, 0  ;;  %p1201_p10 = pnand %p832_p7, %p160_p8 }
   0xf   : > { %s1112_s6 = smov [#allocation3]   ;;  %s1016_s11 = scalar_lea.hbm %s1425_s3, 2048 }
  0x10   : > { %s1433_s30 = scalar_select %p1201_p10, 1, 0 }
  0x11   : > { %s178_s7 = sshll.u32 %s1112_s6, 4  ;;  %p948_p11 = pneg %p1201_p10  ;;  %s179_s7 = int_to_ptr.vmem [resolvable:$true] %s178_s7 }
  0x12   : > { %p1017_p13 = scmp.ne.s32.totalorder %s1425_s3, %s1016_s11  ;;  %p1023_p3 = scmp.lt.u32.totalorder %s1016_s11, %s1425_s3 }
  0x13   : > { %p1209_p12 = pnand %p1428_p9, %p948_p11 }
  0x15   : > { %p1018_p0 = pneg %p1209_p12 }
  0x17   : > { %p1019_p1 = pnand %p1018_p0, %p1017_p13 }
  0x19   : > { %p1020_p2 = pneg %p1019_p1 }
  0x1b   : > { %p1025_p4 = pnand %p1023_p3, %p1020_p2 }
  0x1d   : > { %1028 = shalt.err (!%p1025_p4)
}
  0x1e   : > { %s1029_s16 = scalar_lea.vmem %s179_s7, 2048  ;;  %p1037_p9 = scmp.lt.s32.totalorder %s179_s7, %s179_s7 }
  0x1f   : > { %p1030_p7 = scmp.ne.s32.totalorder %s179_s7, %s1029_s16  ;;  %p1038_p6 = scmp.lt.s32.totalorder %s1029_s16, %s1029_s16 }
  0x21   : > { %p1032_p8 = pnand %p1030_p7, %p1018_p0  ;;  %p1039_p5 = por %p1038_p6, %p1037_p9 }
  0x23   : > { %p1033_p11 = pneg %p1032_p8 }
  0x25   : > { %p1040_p10 = pnand %p1039_p5, %p1033_p11 }
  0x27   : > { %1043 = shalt.err (!%p1040_p10)
}
  0x28   : > { %s1113_s17 = smov 64   ;;  %s1114_s23 = smov 4  }
  0x29   : > { %951 = dma.hbm_to_vmem [thread:$0]  (!%p1209_p12), %s1425_s3, 2048, %s179_s7, [#allocation4], %s1113_s17, %s1113_s17, %s1114_s23  }
  0x2a   : > { %p1435_p13 = scmp.ne.s32.totalorder %s1433_s30, 0 }
  0x2b   : > { %p1436_p1 = scmp.eq.s32.totalorder (!%p1435_p13), %s1173_s22, 0 }
  0x2c   : > { %205 = sbr.rel (%p1435_p13) target bundleno = 810 (0x32a), region = 40 }
  0x33   : > { %1089 = dma.done.wait (%p1436_p1), [#allocation4], 2048   ;;  %p1437_p0 = pmov %p1436_p1 }
  0x34   : > { %p233_p5 = scmp.lt.s32.totalorder %s1173_s22, 1  ;;  %v1115_v0 = vmov 0.0   ;;  %v1000_v4 = vld [vmem:[#allocation3] sm:$0xff]   ;;  %v1001_v5 = vld [vmem:[#allocation3 + $0x8] sm:$0xff]   ;;  %v1002_v6 = vld [vmem:[#allocation3 + $0x10] sm:$0xff]   ;;  %s1116_s10 = smov 8   ;;  %v264_v15 = vlaneseq }
  0x35   : > { %1091 = vsyncadd (%p1437_p0), [#allocation4], 4294965248  ;;  %244 = vst [vmem:[#allocation2 + $0x11] sm:$0x1] %v1115_v0  ;;  %902 = vmatprep.subr.bf16.mxu0 %v1115_v0  ;;  %922 = vmatprep.subr.bf16.mxu1 %v1115_v0  ;;  %v1003_v9 = vld [vmem:[#allocation3 + $0x18] sm:$0xff]   ;;  %s1117_s11 = smov 120  }
  0x36   : > { %243 = vst [vmem:[#allocation2] sm:$0x1] %v1115_v0  ;;  %s234_s30 = scalar_select %p233_p5, %s1173_s22, 1  ;;  %903 = vmatpush3.bf16.msra.mxu0 %v1000_v4  ;;  %v1004_v11 = vld [vmem:[#allocation3 + $0x20] sm:$0xff]   ;;  %vm1118_vm0 = vmmov 0   ;;  %v1005_v12 = vld [vmem:[#allocation3 + $0x28] sm:$0xff]  }
  0x37   : > { %904 = vmatprep.subr.bf16.mxu0 %v1115_v0  ;;  %918 = vmatprep.mubr.msk.bf16.mxu0 %vm1118_vm0, %v1115_v0  ;;  %v1006_v13 = vld [vmem:[#allocation3 + $0x30] sm:$0xff]   ;;  %v1007_v14 = vld [vmem:[#allocation3 + $0x38] sm:$0xff]   ;;  %v1275_v16 = vshrl.u32 %v264_v15, 7  ;;  %v262_v20 = vld [vmem:[%s1423_s1] sm:$0xff]  ;;  %vm343_vm1 = vcmask 1046528   ;;  %vm356_vm2 = vcmask 1045504  }
  0x38   : > { %s871_s6 = sshll.u32 %s234_s30, 3  ;;  %938 = vmatprep.mubr.msk.bf16.mxu1 %vm1118_vm0, %v1115_v0  ;;  %v840_v45 = vld [vmem:[%s1423_s1 + $0x8] ss:$0 sm:$0xff]  ;;  %s874_s14 = sshll.u32 %s1173_s22, 7 }
  0x39   : > { %s237_s9 = scalar_lea.vmem %s1422_s0, %s871_s6  ;;  %v288_v17 = vsub.s32 3, %v1275_v16  ;;  %v295_v18 = vsub.s32 4, %v1275_v16  ;;  %v322_v19 = vsub.s32 7, %v1275_v16  ;;  %v315_v21 = vsub.s32 6, %v1275_v16  ;;  %s1377_s25 = scalar_lea.hbm %s1427_s5, %s874_s14 }
  0x3a   : > { %v1244_v1 = vld [vmem:[%s237_s9] sm:$0xff]   ;;  %905 = vmatpush3.bf16.msra.mxu0 %v1001_v5  ;;  %v305_v22 = vsub.s32 5, %v1275_v16  ;;  %v266_v23 = vsub.s32 0, %v1275_v16  ;;  %v272_v24 = vsub.s32 1, %v1275_v16  ;;  %v280_v31 = vsub.s32 2, %v1275_v16  ;;  %p1438_p9 = scmp.ne.s32.totalorder %s1431_s28, 0 }
  0x3b   : > { %v878_v2 = vunpack.c.h.bf16 %v1244_v1  ;;  %v877_v3 = vunpack.c.l.bf16 %v1244_v1  ;;  %906 = vmatprep.subr.bf16.mxu0 %v1115_v0  ;;  %v289_v25 = vrot.slane %v262_v20, %v288_v17  ;;  %v296_v26 = vrot.slane %v262_v20, %v295_v18  ;;  %s1119_s30 = smov [#allocation6]  }
  0x3c   : > { %v323_v27 = vrot.slane %v262_v20, %v322_v19  ;;  %v316_v28 = vrot.slane %v262_v20, %v315_v21  ;;  %v306_v32 = vrot.slane %v262_v20, %v305_v22  ;;  %v267_v33 = vrot.slane %v262_v20, %v266_v23  ;;  %s1048_s6 = sshll.u32 %s1119_s30, 4  ;;  %s1049_s6 = int_to_ptr.vmem [resolvable:$false] %s1048_s6 }
  0x3d   : > { %246 = vst [vmem:[#allocation2 + $0x9] sm:$0xff] %v878_v2  ;;  %245 = vst [vmem:[#allocation2 + $0x1] sm:$0xff] %v877_v3  ;;  %v273_v34 = vrot.slane %v262_v20, %v272_v24  ;;  %v281_v46 = vrot.slane %v262_v20, %v280_v31  ;;  %s1050_s7 = scalar_lea.vmem %s1049_s6, 256 }
  0x3e   : > { %907 = vmatpush3.bf16.msra.mxu0 %v1002_v6 }
  0x3f   : > { %908 = vmatprep.subr.bf16.mxu0 %v1115_v0 }
  0x42   : > { %909 = vmatpush3.bf16.msra.mxu0 %v1003_v9 }
  0x43   : > { %910 = vmatprep.subr.bf16.mxu0 %v1115_v0 }
  0x44   : > { %v249_v7 = vld [vmem:[#allocation2 + $0x10] sm:$0x3]  ;;  %v1254_v8 = vld [vmem:[#allocation2] sm:$0xff]  ;;  %v1259_v10 = vld [vmem:[#allocation2 + $0x8] sm:$0xff] }
  0x45   : > { %254 = vrot.lane.b32.xlu1 %v249_v7, %s1116_s10  ;;  %250 = vrot.lane.b32.xlu0 %v1254_v8, %s1116_s10  ;;  %v299_v35 = vmul.f32 %v296_v26, %v249_v7  ;;  %v326_v36 = vmul.f32 %v323_v27, %v249_v7  ;;  %v297_v38 = vmul.f32 %v296_v26, %v1254_v8 }
  0x46   : > { %911 = vmatpush3.bf16.msra.mxu0 %v1004_v11  ;;  %v324_v42 = vmul.f32 %v323_v27, %v1254_v8  ;;  %v298_v48 = vmul.f32 %v296_v26, %v1259_v10  ;;  %v325_v49 = vmul.f32 %v323_v27, %v1259_v10  ;;  %v274_v53 = vmul.f32 %v273_v34, %v1254_v8 }
  0x47   : > { %912 = vmatprep.subr.bf16.mxu0 %v1115_v0  ;;  %v275_v55 = vmul.f32 %v273_v34, %v1259_v10 }
  0x49   : > { %256 = vrot.lane.b32.xlu1 %v1254_v8, %s1117_s11  ;;  %252 = vrot.lane.b32.xlu0 %v1259_v10, %s1116_s10 }
  0x4a   : > { %913 = vmatpush3.bf16.msra.mxu0 %v1005_v12 }
  0x4b   : > { %914 = vmatprep.subr.bf16.mxu0 %v1115_v0 }
  0x4d   : > { %260 = vrot.lane.b32.xlu1 %v249_v7, %s1117_s11  ;;  %258 = vrot.lane.b32.xlu0 %v1259_v10, %s1117_s11 }
  0x4e   : > { %915 = vmatpush3.bf16.msra.mxu0 %v1006_v13 }
  0x4f   : > { %916 = vmatprep.subr.bf16.mxu0 %v1115_v0 }
  0x52   : > { %917 = vmatpush3.bf16.msra.mxu0 %v1007_v14 }
  0xb7   : > { %v255_v29 = vpop.permute.xlu1 %254  ;;  %v251_v30 = vpop.permute.xlu0 %250 }
  0xb8   : > { %v290_v37 = vmul.f32 %v289_v25, %v251_v30  ;;  %v292_v39 = vmul.f32 %v289_v25, %v255_v29  ;;  %v319_v40 = vmul.f32 %v316_v28, %v255_v29  ;;  %v317_v41 = vmul.f32 %v316_v28, %v251_v30 }
  0xb9   : > { %v268_v52 = vmul.f32 %v267_v33, %v251_v30 }
  0xba   : > { %v300_v54 = vadd.f32 %v297_v38, %v290_v37  ;;  %v302_v56 = vadd.f32 %v299_v35, %v292_v39  ;;  %v329_v57 = vadd.f32 %v326_v36, %v319_v40  ;;  %v327_v58 = vadd.f32 %v324_v42, %v317_v41  ;;  %v841_v42 = vld [vmem:[%s1424_s2] ss:$0 sm:$0xff] }
  0xbb   : > { %v257_v43 = vpop.permute.xlu1 %256  ;;  %v253_v44 = vpop.permute.xlu0 %252 }
  0xbc   : > { %v307_v47 = vmul.f32 %v306_v32, %v257_v43  ;;  %v291_v50 = vmul.f32 %v289_v25, %v253_v44  ;;  %v318_v51 = vmul.f32 %v316_v28, %v253_v44  ;;  %v334_v59 = vmul.f32 %v840_v45, %v257_v43 }
  0xbd   : > { %v269_v63 = vmul.f32 %v267_v33, %v253_v44  ;;  %v282_v12 = vmul.f32 %v281_v46, %v257_v43  ;;  %v276_v25 = vadd.f32 %v274_v53, %v268_v52  ;;  %v842_v52 = vld [vmem:[%s1426_s4] ss:$0 sm:$0xff] }
  0xbe   : > { %v310_v62 = vadd.f32 %v307_v47, %v300_v54  ;;  %v301_v6 = vadd.f32 %v298_v48, %v291_v50  ;;  %v328_v7 = vadd.f32 %v325_v49, %v318_v51  ;;  %v337_v15 = vadd.f32 %v334_v59, %v327_v58  ;;  %v1008_v50 = vld [vmem:[#allocation3 + $0x40] sm:$0xff]   ;;  %v1009_v51 = vld [vmem:[#allocation3 + $0x48] sm:$0xff]  }
  0xbf   : > { %v261_v60 = vpop.permute.xlu1 %260  ;;  %v259_v61 = vpop.permute.xlu0 %258  ;;  %v277_v26 = vadd.f32 %v275_v55, %v269_v63  ;;  %v284_v34 = vadd.f32 %v282_v12, %v276_v25  ;;  %923 = vmatpush3.bf16.msra.mxu1 %v1008_v50  ;;  %v1012_v63 = vld [vmem:[#allocation3 + $0x60] sm:$0xff]   ;;  %v851_v12 = vld [vmem:[%s1423_s1 + $0x10] sm:$0xff] }
  0xc0   : > { %v309_v4 = vmul.f32 %v306_v32, %v261_v60  ;;  %v336_v5 = vmul.f32 %v840_v45, %v261_v60  ;;  %v308_v9 = vmul.f32 %v306_v32, %v259_v61  ;;  %v335_v11 = vmul.f32 %v840_v45, %v259_v61  ;;  %924 = vmatprep.subr.bf16.mxu1 %v1115_v0 }
  0xc1   : > { %v283_v14 = vmul.f32 %v281_v46, %v259_v61  ;;  %v344_v28 = vrot.slane %v310_v62, 1  ;;  %v357_v32 = vrot.slane %v337_v15, 2  ;;  %v1011_v62 = vld [vmem:[#allocation3 + $0x58] sm:$0xff]   ;;  %v550_v25 = vrot.slane %v851_v12, %v305_v22 }
  0xc2   : > { %v312_v13 = vadd.f32 %v309_v4, %v302_v56  ;;  %v339_v8 = vadd.f32 %v336_v5, %v329_v57  ;;  %v311_v10 = vadd.f32 %v308_v9, %v301_v6  ;;  %v338_v20 = vadd.f32 %v335_v11, %v328_v7  ;;  %v1010_v56 = vld [vmem:[#allocation3 + $0x50] sm:$0xff]   ;;  %v1013_v5 = vld [vmem:[#allocation3 + $0x68] sm:$0xff]   ;;  %v1015_v11 = vld [vmem:[#allocation3 + $0x78] sm:$0xff]  }
  0xc3   : > { %v285_v35 = vadd.f32 %v283_v14, %v277_v26  ;;  %925 = vmatpush3.bf16.msra.mxu1 %v1009_v51  ;;  %v1014_v6 = vld [vmem:[#allocation3 + $0x70] sm:$0xff]   ;;  %v560_v14 = vrot.slane %v851_v12, %v315_v21  ;;  %v525_v21 = vrot.slane %v851_v12, %v280_v31 }
  0xc4   : > { %v347_v27 = vrot.slane %v312_v13, 1  ;;  %v360_v29 = vrot.slane %v339_v8, 2  ;;  %v345_v30 = vrot.slane %v311_v10, 1  ;;  %v358_v33 = vrot.slane %v338_v20, 2  ;;  %926 = vmatprep.subr.bf16.mxu1 %v1115_v0 }
  0xc5   : > { %v533_v13 = vrot.slane %v851_v12, %v288_v17  ;;  %v540_v8 = vrot.slane %v851_v12, %v295_v18  ;;  %v517_v10 = vrot.slane %v851_v12, %v272_v24  ;;  %v511_v17 = vrot.slane %v851_v12, %v266_v23 }
  0xc6   : > { %v346_v36 = vsel %vm343_vm1, %v344_v28, %v345_v30  ;;  %v348_v37 = vsel %vm343_vm1, %v345_v30, %v347_v27  ;;  %v359_v40 = vsel %vm356_vm2, %v357_v32, %v358_v33  ;;  %v361_v41 = vsel %vm356_vm2, %v358_v33, %v360_v29 }
  0xc7   : > { %v352_v38 = vadd.f32 %v348_v37, %v285_v35  ;;  %v351_v39 = vadd.f32 %v346_v36, %v284_v34  ;;  %927 = vmatpush3.bf16.msra.mxu1 %v1010_v56 }
  0xc8   : > { %928 = vmatprep.subr.bf16.mxu1 %v1115_v0 }
  0xc9   : > { %v364_v43 = vadd.f32 %v359_v40, %v351_v39  ;;  %v365_v44 = vadd.f32 %v361_v41, %v352_v38 }
  0xcb   : > { %v371_v45 = vadd.f32 %v841_v42, %v364_v43  ;;  %v372_v46 = vadd.f32 %v841_v42, %v365_v44  ;;  %929 = vmatpush3.bf16.msra.mxu1 %v1011_v62 }
  0xcc   : > { %930 = vmatprep.subr.bf16.mxu1 %v1115_v0 }
  0xcd   : > { %v373_v47 = vmax.f32 %v371_v45, 0.0  ;;  %v374_v48 = vmax.f32 %v372_v46, 0.0 }
  0xcf   : > { %v375_v49 = vpack.c.bf16 %v374_v48, %v373_v47  ;;  %931 = vmatpush3.bf16.msra.mxu1 %v1012_v63 }
  0xd0   : > { %932 = vmatprep.subr.bf16.mxu1 %v1115_v0 }
  0xd1   : > { %919 = vmatmul.mubr.bf16.vlgmr.msra.gmra.mrb[0].mxu0 %v375_v49 }
  0xd3   : > { %933 = vmatpush3.bf16.msra.mxu1 %v1013_v5 }
  0xd4   : > { %934 = vmatprep.subr.bf16.mxu1 %v1115_v0 }
  0xd7   : > { %935 = vmatpush3.bf16.msra.mxu1 %v1014_v6 }
  0xd8   : > { %936 = vmatprep.subr.bf16.mxu1 %v1115_v0  ;;  %v567_v0 = vrot.slane %v851_v12, %v322_v19  ;;  %v853_v19 = vld [vmem:[%s1423_s1 + $0x18] ss:$0 sm:$0xff] }
  0xdb   : > { %937 = vmatpush3.bf16.msra.mxu1 %v1015_v11 }
 0x1a4   : > { %v479_v53 = vpop.f32.mrb[0].mxu0 }
 0x1a5   : > { %v480_v54 = vadd.f32 %v842_v52, %v479_v53  ;;  %v920_v55 = vpop.f32.mrb[1].mxu0 }
 0x1a6   : > { %v482_v57 = vpop.f32.mrb[2].mxu0 }
 0x1a7   : > { %v486_v58 = vmax.f32 %v480_v54, 0.0  ;;  %v483_v59 = vadd.f32 %v842_v52, %v482_v57  ;;  %v921_v60 = vpop.f32.mrb[3].mxu0 }
 0x1a9   : > { %488 = vst [vmem:[#allocation2 + $0x1] sm:$0xff] %v486_v58  ;;  %v487_v61 = vmax.f32 %v483_v59, 0.0 }
 0x1ab   : > { %489 = vst [vmem:[#allocation2 + $0x9] sm:$0xff] %v487_v61 }
 0x1b0   : > { %v490_v4 = vld [vmem:[#allocation2] sm:$0xff] }
 0x1b1   : > { %499 = vrot.lane.b32.xlu1 %v490_v4, %s1117_s11  ;;  %493 = vrot.lane.b32.xlu0 %v490_v4, %s1116_s10  ;;  %v541_v27 = vmul.f32 %v540_v8, %v490_v4  ;;  %v568_v28 = vmul.f32 %v567_v0, %v490_v4  ;;  %v518_v24 = vmul.f32 %v517_v10, %v490_v4 }
 0x1b2   : > { %v492_v7 = vld [vmem:[#allocation2 + $0x10] sm:$0x3]  ;;  %v491_v9 = vld [vmem:[#allocation2 + $0x8] sm:$0xff] }
 0x1b3   : > { %v543_v34 = vmul.f32 %v540_v8, %v492_v7  ;;  %v542_v36 = vmul.f32 %v540_v8, %v491_v9  ;;  %v570_v42 = vmul.f32 %v567_v0, %v492_v7  ;;  %v519_v43 = vmul.f32 %v517_v10, %v491_v9 }
 0x1b4   : > { %v569_v44 = vmul.f32 %v567_v0, %v491_v9 }
 0x1b5   : > { %497 = vrot.lane.b32.xlu0 %v492_v7, %s1116_s10  ;;  %495 = vrot.lane.b32.xlu1 %v491_v9, %s1116_s10  ;;  %s230_s10 = sand.u32 1, %s1102_s19  }
 0x1b6   : > { %s837_s13 = sshll.u32 %s230_s10, 3  ;;  %s1381_s22 = scalar_lea.sflag [#allocation5], %s230_s10 }
 0x1b7   : > { %s232_s15 = scalar_lea.vmem [#allocation6], %s837_s13 }
 0x1b8   : > { %s757_s16 = sshll.u32 %s232_s15, 4  ;;  %s1379_s16 = int_to_ptr.vmem [resolvable:$true] %s757_s16 }
 0x1b9   : > { %501 = vrot.lane.b32.xlu0 %v491_v9, %s1117_s11  ;;  %503 = vrot.lane.b32.xlu1 %v492_v7, %s1117_s11  ;;  %s1044_s26 = scalar_lea.vmem %s1379_s16, 128  ;;  %p1051_p2 = scmp.lt.s32.totalorder %s1379_s16, %s1049_s6 }
 0x1ba   : > { %p1045_p6 = scmp.ne.s32.totalorder %s1379_s16, %s1044_s26  ;;  %p1052_p3 = scmp.lt.s32.totalorder %s1050_s7, %s1044_s26 }
 0x1bc   : > { %p1046_p10 = pnand %p1045_p6, %p1438_p9  ;;  %p1053_p4 = por %p1052_p3, %p1051_p2 }
 0x1be   : > { %p1047_p12 = pneg %p1046_p10 }
 0x1c0   : > { %p1054_p7 = pnand %p1053_p4, %p1047_p12 }
 0x223   : > { %v500_v15 = vpop.permute.xlu1 %499  ;;  %v494_v20 = vpop.permute.xlu0 %493 }
 0x224   : > { %v534_v26 = vmul.f32 %v533_v13, %v494_v20  ;;  %v561_v18 = vmul.f32 %v560_v14, %v494_v20  ;;  %v551_v35 = vmul.f32 %v550_v25, %v500_v15  ;;  %v512_v32 = vmul.f32 %v511_v17, %v494_v20  ;;  %v854_v20 = vld [vmem:[%s1424_s2 + $0x1] ss:$0 sm:$0xff] }
 0x225   : > { %v578_v40 = vmul.f32 %v853_v19, %v500_v15  ;;  %v526_v60 = vmul.f32 %v525_v21, %v500_v15 }
 0x226   : > { %v544_v29 = vadd.f32 %v541_v27, %v534_v26  ;;  %v571_v30 = vadd.f32 %v568_v28, %v561_v18  ;;  %v520_v53 = vadd.f32 %v518_v24, %v512_v32 }
 0x227   : > { %v498_v33 = vpop.permute.xlu0 %497  ;;  %v496_v22 = vpop.permute.xlu1 %495 }
 0x228   : > { %v536_v23 = vmul.f32 %v533_v13, %v498_v33  ;;  %v563_v37 = vmul.f32 %v560_v14, %v498_v33  ;;  %v535_v38 = vmul.f32 %v533_v13, %v496_v22  ;;  %v562_v39 = vmul.f32 %v560_v14, %v496_v22 }
 0x229   : > { %v554_v41 = vadd.f32 %v551_v35, %v544_v29  ;;  %v513_v16 = vmul.f32 %v511_v17, %v496_v22  ;;  %v581_v46 = vadd.f32 %v578_v40, %v571_v30  ;;  %v528_v9 = vadd.f32 %v526_v60, %v520_v53 }
 0x22a   : > { %v546_v45 = vadd.f32 %v543_v34, %v536_v23  ;;  %v545_v31 = vadd.f32 %v542_v36, %v535_v38  ;;  %v572_v49 = vadd.f32 %v569_v44, %v562_v39  ;;  %v573_v54 = vadd.f32 %v570_v42, %v563_v37 }
 0x22b   : > { %v502_v47 = vpop.permute.xlu0 %501  ;;  %v504_v48 = vpop.permute.xlu1 %503  ;;  %v587_v61 = vrot.slane %v554_v41, 1  ;;  %v521_v62 = vadd.f32 %v519_v43, %v513_v16  ;;  %v599_v4 = vrot.slane %v581_v46, 2 }
 0x22c   : > { %v552_v50 = vmul.f32 %v550_v25, %v502_v47  ;;  %v579_v51 = vmul.f32 %v853_v19, %v502_v47  ;;  %v553_v52 = vmul.f32 %v550_v25, %v504_v48  ;;  %v527_v55 = vmul.f32 %v525_v21, %v502_v47 }
 0x22d   : > { %v580_v56 = vmul.f32 %v853_v19, %v504_v48  ;;  %v855_v19 = vld [vmem:[%s1426_s4 + $0x1] ss:$0 sm:$0xff] }
 0x22e   : > { %v555_v57 = vadd.f32 %v552_v50, %v545_v31  ;;  %v582_v58 = vadd.f32 %v579_v51, %v572_v49  ;;  %v556_v59 = vadd.f32 %v553_v52, %v546_v45  ;;  %v529_v11 = vadd.f32 %v527_v55, %v521_v62 }
 0x22f   : > { %v583_v63 = vadd.f32 %v580_v56, %v573_v54 }
 0x230   : > { %v588_v5 = vrot.slane %v555_v57, 1  ;;  %v600_v6 = vrot.slane %v582_v58, 2  ;;  %v590_v7 = vrot.slane %v556_v59, 1 }
 0x231   : > { %v602_v12 = vrot.slane %v583_v63, 2 }
 0x232   : > { %v589_v13 = vsel %vm343_vm1, %v587_v61, %v588_v5  ;;  %v601_v8 = vsel %vm356_vm2, %v599_v4, %v600_v6  ;;  %v591_v14 = vsel %vm343_vm1, %v588_v5, %v590_v7 }
 0x233   : > { %v594_v0 = vadd.f32 %v589_v13, %v528_v9  ;;  %v595_v10 = vadd.f32 %v591_v14, %v529_v11  ;;  %v603_v15 = vsel %vm356_vm2, %v600_v6, %v602_v12 }
 0x235   : > { %v606_v25 = vadd.f32 %v601_v8, %v594_v0  ;;  %v607_v17 = vadd.f32 %v603_v15, %v595_v10 }
 0x237   : > { %v613_v26 = vadd.f32 %v854_v20, %v606_v25  ;;  %v614_v27 = vadd.f32 %v854_v20, %v607_v17 }
 0x239   : > { %v615_v18 = vmax.f32 %v613_v26, 0.0  ;;  %v616_v28 = vmax.f32 %v614_v27, 0.0 }
 0x23b   : > { %v617_v29 = vpack.c.bf16 %v616_v28, %v615_v18 }
 0x23d   : > { %939 = vmatmul.mubr.bf16.vlgmr.msra.gmra.mrb[0].mxu1 %v617_v29 }
 0x310   : > { %v722_v21 = vpop.f32.mrb[0].mxu1 }
 0x311   : > { %v723_v24 = vadd.f32 %v855_v19, %v722_v21  ;;  %v940_v30 = vpop.f32.mrb[1].mxu1 }
 0x312   : > { %v725_v33 = vpop.f32.mrb[2].mxu1 }
 0x313   : > { %v729_v34 = vmax.f32 %v723_v24, 0.0  ;;  %v726_v22 = vadd.f32 %v855_v19, %v725_v33  ;;  %v941_v35 = vpop.f32.mrb[3].mxu1 }
 0x315   : > { %v730_v32 = vmax.f32 %v726_v22, 0.0  ;;  %v731_v23 = vadd.f32 %v877_v3, %v729_v34 }
 0x317   : > { %v732_v36 = vadd.f32 %v878_v2, %v730_v32 }
 0x319   : > { %v882_v37 = vpack.c.bf16 %v732_v36, %v731_v23 }
 0x31b   : > { %883 = vst [vmem:[%s232_s15] sm:$0xff] %v882_v37  }
 0x31c   : > { %1057 = shalt.err (!%p1054_p7)
}
 0x31d   : > { %s1058_s8 = scalar_lea.hbm %s1377_s25, 128  ;;  %s1062_s11 = scalar_lea.hbm %s1427_s5, 256 }
 0x31e   : > { %p1059_p8 = scmp.ne.s32.totalorder %s1377_s25, %s1058_s8  ;;  %p1063_p1 = scmp.lt.u32.totalorder %s1377_s25, %s1427_s5 }
 0x31f   : > { %p1064_p0 = scmp.lt.u32.totalorder %s1062_s11, %s1058_s8  ;;  %p1066_p6 = scmp.lt.u32.totalorder %s1058_s8, %s1377_s25 }
 0x320   : > { %p1060_p11 = pnand %p1059_p8, %p1438_p9 }
 0x321   : > { %p1065_p5 = por %p1064_p0, %p1063_p1 }
 0x322   : > { %p1061_p13 = pneg %p1060_p11 }
 0x323   : > { %p1067_p10 = por %p1066_p6, %p1065_p5 }
 0x325   : > { %p1068_p12 = pnand %p1067_p10, %p1061_p13 }
 0x327   : > { %1071 = shalt.err (!%p1068_p12)
}
 0x328   : > { %s1120_s14 = smov 64   ;;  %s1121_s15 = smov 4  }
 0x329   : > { %946 = dma.vmem_to_hbm [thread:$0]  (%p1438_p9), %s1379_s16, 128, %s1377_s25, %s1381_s22, %s1120_s14, %s1120_s14, %s1121_s15  }
 0x32a PF: > { %p958_p2 = scmp.ge.s32.totalorder %s1110_s21, 2  ;;  %s772_s17 = sand.u32 1, %s1098_s18  }
 0x32b   : > { %p1439_p3 = scmp.ne.s32.totalorder %s1432_s29, 0  ;;  %s773_s23 = scalar_lea.sflag [#allocation5], %s772_s17 }
 0x32d   : > { %p953_p4 = pnand %p958_p2, %p1439_p3 }
 0x32f   : > { %1093 = dma.done.wait (!%p953_p4), %s773_s23, 128  }
 0x330   : > { %1095 = vsyncadd (!%p953_p4), %s773_s23, 4294967168  ;;  %p16_p7 = scmp.ge.s32.totalorder %s1177_s24, 4   ;;  %s1440_s18 = smov %s1102_s19 }
 0x331   : > { %s1441_s19 = smov %s1106_s20  ;;  %s1442_s20 = smov %s1188_s27 }
 0x332   : > { %s1443_s21 = smov %s1177_s24  ;;  %18 = sbr.rel (!%p16_p7) target bundleno = 4 (0x4), region = 82 }
 0x339   :  { %778 = vsyncpa [#allocation4], 1 }
 0x33a   :  { %780 = vsyncpa [#allocation4 + $0x1], 1 }
 0x33b   :  { %781 = vsyncpa [#allocation5], 1 }
 0x33c   :  { %783 = vsyncpa [#allocation5 + $0x1], 1 }

// kernel: tpu_custom_call.1
= control target key start
LH: loop header
LB: loop body
LE: loop exit
PB: predicated region body
PF: predicated region fallthrough
CT: control target
= control target key end

     0   :  { %10 = vsyncpa [#allocation4], 0  ;;  %s1422_s0 = inlined_call_operand.vmem [shape: bf16[2,16,128], index: 0, kind: input, shape index: {}]   ;;  %s1423_s1 = inlined_call_operand.vmem [shape: f32[2,9,128], index: 1, kind: input, shape index: {}]   ;;  %s1424_s2 = inlined_call_operand.vmem [shape: f32[2,128], index: 2, kind: input, shape index: {}]   ;;  %s1425_s3 = inlined_call_operand.hbm [shape: bf16[2,128,128], index: 3, kind: input, shape index: {}]   ;;  %s1426_s4 = inlined_call_operand.vmem [shape: f32[2,128], index: 4, kind: input, shape index: {}]   ;;  %s1427_s5 = inlined_call_operand.hbm [shape: bf16[2,16,128], index: 5, kind: output, shape index: {}]  }
   0x1   :  { %11 = vsyncpa [#allocation5], 0 }
   0x2   :  { %13 = vsyncpa [#allocation5 + $0x1], 0  ;;  %s1152_s18 = smov 0   ;;  %s1154_s19 = smov 0  }
   0x3   :  { %s1156_s20 = smov 0   ;;  %s1158_s21 = smov 0  }
   0x4 LB: > { %s1173_s22 = sadd.s32 4294967295, %s1110_s21   ;;  %s831_s23 = sadd.s32 4294967294, %s1110_s21   ;;  %s1110_s21 = sphi %s1158_s21, %s1443_s21   ;;  %s1106_s20 = sphi %s1156_s20, %s1442_s20   ;;  %s1102_s19 = sphi %s1154_s19, %s1441_s19   ;;  %s1098_s18 = sphi %s1152_s18, %s1440_s18  }
   0x5   : > { %s1177_s24 = sadd.s32 1, %s1110_s21   ;;  %s136_s25 = sadd.s32 1, %s1106_s20 }
   0x6   : > { %s133_s26 = ssub.s32 %s1110_s21, %s1177_s24  ;;  %p146_p0 = scmp.ne.s32.totalorder %s1106_s20, %s1102_s19 }
   0x7   : > { %p134_p1 = scmp.eq.s32.totalorder %s133_s26, 0  ;;  %p147_p2 = scmp.eq.s32.totalorder %s1173_s22, 1 }
   0x8   : > { %p152_p3 = scmp.ne.s32.totalorder %s1102_s19, %s1098_s18  ;;  %p153_p4 = scmp.eq.s32.totalorder %s831_s23, 1 }
   0x9   : > { %s1188_s27 = scalar_select %p134_p1, %s1106_s20, %s136_s25  }
   0xa   : > { %p1190_p5 = por %p147_p2, %p146_p0  ;;  %p1194_p6 = por %p153_p4, %p152_p3 }
   0xb   : > { %p832_p7 = scmp.ge.s32.totalorder %s1110_s21, 1  ;;  %p160_p8 = scmp.lt.s32.totalorder %s1110_s21, 3 }
   0xc   : > { %s1431_s28 = scalar_select %p1190_p5, 1, 0 }
   0xd   : > { %s1432_s29 = scalar_select %p1194_p6, 1, 0 }
   0xe   : > { %p1428_p9 = scmp.eq.s32.totalorder %s1173_s22, 0  ;;  %p1201_p10 = pnand %p832_p7, %p160_p8 }
   0xf   : > { %s1112_s6 = smov [#allocation3]   ;;  %s1016_s11 = scalar_lea.hbm %s1425_s3, 2048 }
  0x10   : > { %s1433_s30 = scalar_select %p1201_p10, 1, 0 }
  0x11   : > { %s178_s7 = sshll.u32 %s1112_s6, 4  ;;  %p948_p11 = pneg %p1201_p10  ;;  %s179_s7 = int_to_ptr.vmem [resolvable:$true] %s178_s7 }
  0x12   : > { %p1017_p13 = scmp.ne.s32.totalorder %s1425_s3, %s1016_s11  ;;  %p1023_p3 = scmp.lt.u32.totalorder %s1016_s11, %s1425_s3 }
  0x13   : > { %p1209_p12 = pnand %p1428_p9, %p948_p11 }
  0x15   : > { %p1018_p0 = pneg %p1209_p12 }
  0x17   : > { %p1019_p1 = pnand %p1018_p0, %p1017_p13 }
  0x19   : > { %p1020_p2 = pneg %p1019_p1 }
  0x1b   : > { %p1025_p4 = pnand %p1023_p3, %p1020_p2 }
  0x1d   : > { %1028 = shalt.err (!%p1025_p4)
}
  0x1e   : > { %s1029_s16 = scalar_lea.vmem %s179_s7, 2048  ;;  %p1037_p9 = scmp.lt.s32.totalorder %s179_s7, %s179_s7 }
  0x1f   : > { %p1030_p7 = scmp.ne.s32.totalorder %s179_s7, %s1029_s16  ;;  %p1038_p6 = scmp.lt.s32.totalorder %s1029_s16, %s1029_s16 }
  0x21   : > { %p1032_p8 = pnand %p1030_p7, %p1018_p0  ;;  %p1039_p5 = por %p1038_p6, %p1037_p9 }
  0x23   : > { %p1033_p11 = pneg %p1032_p8 }
  0x25   : > { %p1040_p10 = pnand %p1039_p5, %p1033_p11 }
  0x27   : > { %1043 = shalt.err (!%p1040_p10)
}
  0x28   : > { %s1113_s17 = smov 64   ;;  %s1114_s23 = smov 4  }
  0x29   : > { %951 = dma.hbm_to_vmem [thread:$0]  (!%p1209_p12), %s1425_s3, 2048, %s179_s7, [#allocation4], %s1113_s17, %s1113_s17, %s1114_s23  }
  0x2a   : > { %p1435_p13 = scmp.ne.s32.totalorder %s1433_s30, 0 }
  0x2b   : > { %p1436_p1 = scmp.eq.s32.totalorder (!%p1435_p13), %s1173_s22, 0 }
  0x2c   : > { %205 = sbr.rel (%p1435_p13) target bundleno = 810 (0x32a), region = 40 }
  0x33   : > { %1089 = dma.done.wait (%p1436_p1), [#allocation4], 2048   ;;  %p1437_p0 = pmov %p1436_p1 }
  0x34   : > { %p233_p5 = scmp.lt.s32.totalorder %s1173_s22, 1  ;;  %v1115_v0 = vmov 0.0   ;;  %v1000_v4 = vld [vmem:[#allocation3] sm:$0xff]   ;;  %v1001_v5 = vld [vmem:[#allocation3 + $0x8] sm:$0xff]   ;;  %v1002_v6 = vld [vmem:[#allocation3 + $0x10] sm:$0xff]   ;;  %s1116_s10 = smov 8   ;;  %v264_v15 = vlaneseq }
  0x35   : > { %1091 = vsyncadd (%p1437_p0), [#allocation4], 4294965248  ;;  %244 = vst [vmem:[#allocation2 + $0x11] sm:$0x1] %v1115_v0  ;;  %902 = vmatprep.subr.bf16.mxu0 %v1115_v0  ;;  %922 = vmatprep.subr.bf16.mxu1 %v1115_v0  ;;  %v1003_v9 = vld [vmem:[#allocation3 + $0x18] sm:$0xff]   ;;  %s1117_s11 = smov 120  }
  0x36   : > { %243 = vst [vmem:[#allocation2] sm:$0x1] %v1115_v0  ;;  %s234_s30 = scalar_select %p233_p5, %s1173_s22, 1  ;;  %903 = vmatpush3.bf16.msra.mxu0 %v1000_v4  ;;  %v1004_v11 = vld [vmem:[#allocation3 + $0x20] sm:$0xff]   ;;  %vm1118_vm0 = vmmov 0   ;;  %v1005_v12 = vld [vmem:[#allocation3 + $0x28] sm:$0xff]  }
  0x37   : > { %904 = vmatprep.subr.bf16.mxu0 %v1115_v0  ;;  %918 = vmatprep.mubr.msk.bf16.mxu0 %vm1118_vm0, %v1115_v0  ;;  %v1006_v13 = vld [vmem:[#allocation3 + $0x30] sm:$0xff]   ;;  %v1007_v14 = vld [vmem:[#allocation3 + $0x38] sm:$0xff]   ;;  %v1275_v16 = vshrl.u32 %v264_v15, 7  ;;  %v262_v20 = vld [vmem:[%s1423_s1] sm:$0xff]  ;;  %vm343_vm1 = vcmask 1046528   ;;  %vm356_vm2 = vcmask 1045504  }
  0x38   : > { %s871_s6 = sshll.u32 %s234_s30, 3  ;;  %938 = vmatprep.mubr.msk.bf16.mxu1 %vm1118_vm0, %v1115_v0  ;;  %v840_v45 = vld [vmem:[%s1423_s1 + $0x8] ss:$0 sm:$0xff]  ;;  %s874_s14 = sshll.u32 %s1173_s22, 7 }
  0x39   : > { %s237_s9 = scalar_lea.vmem %s1422_s0, %s871_s6  ;;  %v288_v17 = vsub.s32 3, %v1275_v16  ;;  %v295_v18 = vsub.s32 4, %v1275_v16  ;;  %v322_v19 = vsub.s32 7, %v1275_v16  ;;  %v315_v21 = vsub.s32 6, %v1275_v16  ;;  %s1377_s25 = scalar_lea.hbm %s1427_s5, %s874_s14 }
  0x3a   : > { %v1244_v1 = vld [vmem:[%s237_s9] sm:$0xff]   ;;  %905 = vmatpush3.bf16.msra.mxu0 %v1001_v5  ;;  %v305_v22 = vsub.s32 5, %v1275_v16  ;;  %v266_v23 = vsub.s32 0, %v1275_v16  ;;  %v272_v24 = vsub.s32 1, %v1275_v16  ;;  %v280_v31 = vsub.s32 2, %v1275_v16  ;;  %p1438_p9 = scmp.ne.s32.totalorder %s1431_s28, 0 }
  0x3b   : > { %v878_v2 = vunpack.c.h.bf16 %v1244_v1  ;;  %v877_v3 = vunpack.c.l.bf16 %v1244_v1  ;;  %906 = vmatprep.subr.bf16.mxu0 %v1115_v0  ;;  %v289_v25 = vrot.slane %v262_v20, %v288_v17  ;;  %v296_v26 = vrot.slane %v262_v20, %v295_v18  ;;  %s1119_s30 = smov [#allocation6]  }
  0x3c   : > { %v323_v27 = vrot.slane %v262_v20, %v322_v19  ;;  %v316_v28 = vrot.slane %v262_v20, %v315_v21  ;;  %v306_v32 = vrot.slane %v262_v20, %v305_v22  ;;  %v267_v33 = vrot.slane %v262_v20, %v266_v23  ;;  %s1048_s6 = sshll.u32 %s1119_s30, 4  ;;  %s1049_s6 = int_to_ptr.vmem [resolvable:$false] %s1048_s6 }
  0x3d   : > { %246 = vst [vmem:[#allocation2 + $0x9] sm:$0xff] %v878_v2  ;;  %245 = vst [vmem:[#allocation2 + $0x1] sm:$0xff] %v877_v3  ;;  %v273_v34 = vrot.slane %v262_v20, %v272_v24  ;;  %v281_v46 = vrot.slane %v262_v20, %v280_v31  ;;  %s1050_s7 = scalar_lea.vmem %s1049_s6, 256 }
  0x3e   : > { %907 = vmatpush3.bf16.msra.mxu0 %v1002_v6 }
  0x3f   : > { %908 = vmatprep.subr.bf16.mxu0 %v1115_v0 }
  0x42   : > { %909 = vmatpush3.bf16.msra.mxu0 %v1003_v9 }
  0x43   : > { %910 = vmatprep.subr.bf16.mxu0 %v1115_v0 }
  0x44   : > { %v249_v7 = vld [vmem:[#allocation2 + $0x10] sm:$0x3]  ;;  %v1254_v8 = vld [vmem:[#allocation2] sm:$0xff]  ;;  %v1259_v10 = vld [vmem:[#allocation2 + $0x8] sm:$0xff] }
  0x45   : > { %254 = vrot.lane.b32.xlu1 %v249_v7, %s1116_s10  ;;  %250 = vrot.lane.b32.xlu0 %v1254_v8, %s1116_s10  ;;  %v299_v35 = vmul.f32 %v296_v26, %v249_v7  ;;  %v326_v36 = vmul.f32 %v323_v27, %v249_v7  ;;  %v297_v38 = vmul.f32 %v296_v26, %v1254_v8 }
  0x46   : > { %911 = vmatpush3.bf16.msra.mxu0 %v1004_v11  ;;  %v324_v42 = vmul.f32 %v323_v27, %v1254_v8  ;;  %v298_v48 = vmul.f32 %v296_v26, %v1259_v10  ;;  %v325_v49 = vmul.f32 %v323_v27, %v1259_v10  ;;  %v274_v53 = vmul.f32 %v273_v34, %v1254_v8 }
  0x47   : > { %912 = vmatprep.subr.bf16.mxu0 %v1115_v0  ;;  %v275_v55 = vmul.f32 %v273_v34, %v1259_v10 }
  0x49   : > { %256 = vrot.lane.b32.xlu1 %v1254_v8, %s1117_s11  ;;  %252 = vrot.lane.b32.xlu0 %v1259_v10, %s1116_s10 }
  0x4a   : > { %913 = vmatpush3.bf16.msra.mxu0 %v1005_v12 }
  0x4b   : > { %914 = vmatprep.subr.bf16.mxu0 %v1115_v0 }
  0x4d   : > { %260 = vrot.lane.b32.xlu1 %v249_v7, %s1117_s11  ;;  %258 = vrot.lane.b32.xlu0 %v1259_v10, %s1117_s11 }
  0x4e   : > { %915 = vmatpush3.bf16.msra.mxu0 %v1006_v13 }
  0x4f   : > { %916 = vmatprep.subr.bf16.mxu0 %v1115_v0 }
  0x52   : > { %917 = vmatpush3.bf16.msra.mxu0 %v1007_v14 }
  0xb7   : > { %v255_v29 = vpop.permute.xlu1 %254  ;;  %v251_v30 = vpop.permute.xlu0 %250 }
  0xb8   : > { %v290_v37 = vmul.f32 %v289_v25, %v251_v30  ;;  %v292_v39 = vmul.f32 %v289_v25, %v255_v29  ;;  %v319_v40 = vmul.f32 %v316_v28, %v255_v29  ;;  %v317_v41 = vmul.f32 %v316_v28, %v251_v30 }
  0xb9   : > { %v268_v52 = vmul.f32 %v267_v33, %v251_v30 }
  0xba   : > { %v300_v54 = vadd.f32 %v297_v38, %v290_v37  ;;  %v302_v56 = vadd.f32 %v299_v35, %v292_v39  ;;  %v329_v57 = vadd.f32 %v326_v36, %v319_v40  ;;  %v327_v58 = vadd.f32 %v324_v42, %v317_v41  ;;  %v841_v42 = vld [vmem:[%s1424_s2] ss:$0 sm:$0xff] }
  0xbb   : > { %v257_v43 = vpop.permute.xlu1 %256  ;;  %v253_v44 = vpop.permute.xlu0 %252 }
  0xbc   : > { %v307_v47 = vmul.f32 %v306_v32, %v257_v43  ;;  %v291_v50 = vmul.f32 %v289_v25, %v253_v44  ;;  %v318_v51 = vmul.f32 %v316_v28, %v253_v44  ;;  %v334_v59 = vmul.f32 %v840_v45, %v257_v43 }
  0xbd   : > { %v269_v63 = vmul.f32 %v267_v33, %v253_v44  ;;  %v282_v12 = vmul.f32 %v281_v46, %v257_v43  ;;  %v276_v25 = vadd.f32 %v274_v53, %v268_v52  ;;  %v842_v52 = vld [vmem:[%s1426_s4] ss:$0 sm:$0xff] }
  0xbe   : > { %v310_v62 = vadd.f32 %v307_v47, %v300_v54  ;;  %v301_v6 = vadd.f32 %v298_v48, %v291_v50  ;;  %v328_v7 = vadd.f32 %v325_v49, %v318_v51  ;;  %v337_v15 = vadd.f32 %v334_v59, %v327_v58  ;;  %v1008_v50 = vld [vmem:[#allocation3 + $0x40] sm:$0xff]   ;;  %v1009_v51 = vld [vmem:[#allocation3 + $0x48] sm:$0xff]  }
  0xbf   : > { %v261_v60 = vpop.permute.xlu1 %260  ;;  %v259_v61 = vpop.permute.xlu0 %258  ;;  %v277_v26 = vadd.f32 %v275_v55, %v269_v63  ;;  %v284_v34 = vadd.f32 %v282_v12, %v276_v25  ;;  %923 = vmatpush3.bf16.msra.mxu1 %v1008_v50  ;;  %v1012_v63 = vld [vmem:[#allocation3 + $0x60] sm:$0xff]   ;;  %v851_v12 = vld [vmem:[%s1423_s1 + $0x10] sm:$0xff] }
  0xc0   : > { %v309_v4 = vmul.f32 %v306_v32, %v261_v60  ;;  %v336_v5 = vmul.f32 %v840_v45, %v261_v60  ;;  %v308_v9 = vmul.f32 %v306_v32, %v259_v61  ;;  %v335_v11 = vmul.f32 %v840_v45, %v259_v61  ;;  %924 = vmatprep.subr.bf16.mxu1 %v1115_v0 }
  0xc1   : > { %v283_v14 = vmul.f32 %v281_v46, %v259_v61  ;;  %v344_v28 = vrot.slane %v310_v62, 1  ;;  %v357_v32 = vrot.slane %v337_v15, 2  ;;  %v1011_v62 = vld [vmem:[#allocation3 + $0x58] sm:$0xff]   ;;  %v550_v25 = vrot.slane %v851_v12, %v305_v22 }
  0xc2   : > { %v312_v13 = vadd.f32 %v309_v4, %v302_v56  ;;  %v339_v8 = vadd.f32 %v336_v5, %v329_v57  ;;  %v311_v10 = vadd.f32 %v308_v9, %v301_v6  ;;  %v338_v20 = vadd.f32 %v335_v11, %v328_v7  ;;  %v1010_v56 = vld [vmem:[#allocation3 + $0x50] sm:$0xff]   ;;  %v1013_v5 = vld [vmem:[#allocation3 + $0x68] sm:$0xff]   ;;  %v1015_v11 = vld [vmem:[#allocation3 + $0x78] sm:$0xff]  }
  0xc3   : > { %v285_v35 = vadd.f32 %v283_v14, %v277_v26  ;;  %925 = vmatpush3.bf16.msra.mxu1 %v1009_v51  ;;  %v1014_v6 = vld [vmem:[#allocation3 + $0x70] sm:$0xff]   ;;  %v560_v14 = vrot.slane %v851_v12, %v315_v21  ;;  %v525_v21 = vrot.slane %v851_v12, %v280_v31 }
  0xc4   : > { %v347_v27 = vrot.slane %v312_v13, 1  ;;  %v360_v29 = vrot.slane %v339_v8, 2  ;;  %v345_v30 = vrot.slane %v311_v10, 1  ;;  %v358_v33 = vrot.slane %v338_v20, 2  ;;  %926 = vmatprep.subr.bf16.mxu1 %v1115_v0 }
  0xc5   : > { %v533_v13 = vrot.slane %v851_v12, %v288_v17  ;;  %v540_v8 = vrot.slane %v851_v12, %v295_v18  ;;  %v517_v10 = vrot.slane %v851_v12, %v272_v24  ;;  %v511_v17 = vrot.slane %v851_v12, %v266_v23 }
  0xc6   : > { %v346_v36 = vsel %vm343_vm1, %v344_v28, %v345_v30  ;;  %v348_v37 = vsel %vm343_vm1, %v345_v30, %v347_v27  ;;  %v359_v40 = vsel %vm356_vm2, %v357_v32, %v358_v33  ;;  %v361_v41 = vsel %vm356_vm2, %v358_v33, %v360_v29 }
  0xc7   : > { %v352_v38 = vadd.f32 %v348_v37, %v285_v35  ;;  %v351_v39 = vadd.f32 %v346_v36, %v284_v34  ;;  %927 = vmatpush3.bf16.msra.mxu1 %v1010_v56 }
  0xc8   : > { %928 = vmatprep.subr.bf16.mxu1 %v1115_v0 }
  0xc9   : > { %v364_v43 = vadd.f32 %v359_v40, %v351_v39  ;;  %v365_v44 = vadd.f32 %v361_v41, %v352_v38 }
  0xcb   : > { %v371_v45 = vadd.f32 %v841_v42, %v364_v43  ;;  %v372_v46 = vadd.f32 %v841_v42, %v365_v44  ;;  %929 = vmatpush3.bf16.msra.mxu1 %v1011_v62 }
  0xcc   : > { %930 = vmatprep.subr.bf16.mxu1 %v1115_v0 }
  0xcd   : > { %v373_v47 = vmax.f32 %v371_v45, 0.0  ;;  %v374_v48 = vmax.f32 %v372_v46, 0.0 }
  0xcf   : > { %v375_v49 = vpack.c.bf16 %v374_v48, %v373_v47  ;;  %931 = vmatpush3.bf16.msra.mxu1 %v1012_v63 }
  0xd0   : > { %932 = vmatprep.subr.bf16.mxu1 %v1115_v0 }
  0xd1   : > { %919 = vmatmul.mubr.bf16.vlgmr.msra.gmra.mrb[0].mxu0 %v375_v49 }
  0xd3   : > { %933 = vmatpush3.bf16.msra.mxu1 %v1013_v5 }
  0xd4   : > { %934 = vmatprep.subr.bf16.mxu1 %v1115_v0 }
  0xd7   : > { %935 = vmatpush3.bf16.msra.mxu1 %v1014_v6 }
  0xd8   : > { %936 = vmatprep.subr.bf16.mxu1 %v1115_v0  ;;  %v567_v0 = vrot.slane %v851_v12, %v322_v19  ;;  %v853_v19 = vld [vmem:[%s1423_s1 + $0x18] ss:$0 sm:$0xff] }
  0xdb   : > { %937 = vmatpush3.bf16.msra.mxu1 %v1015_v11 }
 0x1a4   : > { %v479_v53 = vpop.f32.mrb[0].mxu0 }
 0x1a5   : > { %v480_v54 = vadd.f32 %v842_v52, %v479_v53  ;;  %v920_v55 = vpop.f32.mrb[1].mxu0 }
 0x1a6   : > { %v482_v57 = vpop.f32.mrb[2].mxu0 }
 0x1a7   : > { %v486_v58 = vmax.f32 %v480_v54, 0.0  ;;  %v483_v59 = vadd.f32 %v842_v52, %v482_v57  ;;  %v921_v60 = vpop.f32.mrb[3].mxu0 }
 0x1a9   : > { %488 = vst [vmem:[#allocation2 + $0x1] sm:$0xff] %v486_v58  ;;  %v487_v61 = vmax.f32 %v483_v59, 0.0 }
 0x1ab   : > { %489 = vst [vmem:[#allocation2 + $0x9] sm:$0xff] %v487_v61 }
 0x1b0   : > { %v490_v4 = vld [vmem:[#allocation2] sm:$0xff] }
 0x1b1   : > { %499 = vrot.lane.b32.xlu1 %v490_v4, %s1117_s11  ;;  %493 = vrot.lane.b32.xlu0 %v490_v4, %s1116_s10  ;;  %v541_v27 = vmul.f32 %v540_v8, %v490_v4  ;;  %v568_v28 = vmul.f32 %v567_v0, %v490_v4  ;;  %v518_v24 = vmul.f32 %v517_v10, %v490_v4 }
 0x1b2   : > { %v492_v7 = vld [vmem:[#allocation2 + $0x10] sm:$0x3]  ;;  %v491_v9 = vld [vmem:[#allocation2 + $0x8] sm:$0xff] }
 0x1b3   : > { %v543_v34 = vmul.f32 %v540_v8, %v492_v7  ;;  %v542_v36 = vmul.f32 %v540_v8, %v491_v9  ;;  %v570_v42 = vmul.f32 %v567_v0, %v492_v7  ;;  %v519_v43 = vmul.f32 %v517_v10, %v491_v9 }
 0x1b4   : > { %v569_v44 = vmul.f32 %v567_v0, %v491_v9 }
 0x1b5   : > { %497 = vrot.lane.b32.xlu0 %v492_v7, %s1116_s10  ;;  %495 = vrot.lane.b32.xlu1 %v491_v9, %s1116_s10  ;;  %s230_s10 = sand.u32 1, %s1102_s19  }
 0x1b6   : > { %s837_s13 = sshll.u32 %s230_s10, 3  ;;  %s1381_s22 = scalar_lea.sflag [#allocation5], %s230_s10 }
 0x1b7   : > { %s232_s15 = scalar_lea.vmem [#allocation6], %s837_s13 }
 0x1b8   : > { %s757_s16 = sshll.u32 %s232_s15, 4  ;;  %s1379_s16 = int_to_ptr.vmem [resolvable:$true] %s757_s16 }
 0x1b9   : > { %501 = vrot.lane.b32.xlu0 %v491_v9, %s1117_s11  ;;  %503 = vrot.lane.b32.xlu1 %v492_v7, %s1117_s11  ;;  %s1044_s26 = scalar_lea.vmem %s1379_s16, 128  ;;  %p1051_p2 = scmp.lt.s32.totalorder %s1379_s16, %s1049_s6 }
 0x1ba   : > { %p1045_p6 = scmp.ne.s32.totalorder %s1379_s16, %s1044_s26  ;;  %p1052_p3 = scmp.lt.s32.totalorder %s1050_s7, %s1044_s26 }
 0x1bc   : > { %p1046_p10 = pnand %p1045_p6, %p1438_p9  ;;  %p1053_p4 = por %p1052_p3, %p1051_p2 }
 0x1be   : > { %p1047_p12 = pneg %p1046_p10 }
 0x1c0   : > { %p1054_p7 = pnand %p1053_p4, %p1047_p12 }
 0x223   : > { %v500_v15 = vpop.permute.xlu1 %499  ;;  %v494_v20 = vpop.permute.xlu0 %493 }
 0x224   : > { %v534_v26 = vmul.f32 %v533_v13, %v494_v20  ;;  %v561_v18 = vmul.f32 %v560_v14, %v494_v20  ;;  %v551_v35 = vmul.f32 %v550_v25, %v500_v15  ;;  %v512_v32 = vmul.f32 %v511_v17, %v494_v20  ;;  %v854_v20 = vld [vmem:[%s1424_s2 + $0x1] ss:$0 sm:$0xff] }
 0x225   : > { %v578_v40 = vmul.f32 %v853_v19, %v500_v15  ;;  %v526_v60 = vmul.f32 %v525_v21, %v500_v15 }
 0x226   : > { %v544_v29 = vadd.f32 %v541_v27, %v534_v26  ;;  %v571_v30 = vadd.f32 %v568_v28, %v561_v18  ;;  %v520_v53 = vadd.f32 %v518_v24, %v512_v32 }
 0x227   : > { %v498_v33 = vpop.permute.xlu0 %497  ;;  %v496_v22 = vpop.permute.xlu1 %495 }
 0x228   : > { %v536_v23 = vmul.f32 %v533_v13, %v498_v33  ;;  %v563_v37 = vmul.f32 %v560_v14, %v498_v33  ;;  %v535_v38 = vmul.f32 %v533_v13, %v496_v22  ;;  %v562_v39 = vmul.f32 %v560_v14, %v496_v22 }
 0x229   : > { %v554_v41 = vadd.f32 %v551_v35, %v544_v29  ;;  %v513_v16 = vmul.f32 %v511_v17, %v496_v22  ;;  %v581_v46 = vadd.f32 %v578_v40, %v571_v30  ;;  %v528_v9 = vadd.f32 %v526_v60, %v520_v53 }
 0x22a   : > { %v546_v45 = vadd.f32 %v543_v34, %v536_v23  ;;  %v545_v31 = vadd.f32 %v542_v36, %v535_v38  ;;  %v572_v49 = vadd.f32 %v569_v44, %v562_v39  ;;  %v573_v54 = vadd.f32 %v570_v42, %v563_v37 }
 0x22b   : > { %v502_v47 = vpop.permute.xlu0 %501  ;;  %v504_v48 = vpop.permute.xlu1 %503  ;;  %v587_v61 = vrot.slane %v554_v41, 1  ;;  %v521_v62 = vadd.f32 %v519_v43, %v513_v16  ;;  %v599_v4 = vrot.slane %v581_v46, 2 }
 0x22c   : > { %v552_v50 = vmul.f32 %v550_v25, %v502_v47  ;;  %v579_v51 = vmul.f32 %v853_v19, %v502_v47  ;;  %v553_v52 = vmul.f32 %v550_v25, %v504_v48  ;;  %v527_v55 = vmul.f32 %v525_v21, %v502_v47 }
 0x22d   : > { %v580_v56 = vmul.f32 %v853_v19, %v504_v48  ;;  %v855_v19 = vld [vmem:[%s1426_s4 + $0x1] ss:$0 sm:$0xff] }
 0x22e   : > { %v555_v57 = vadd.f32 %v552_v50, %v545_v31  ;;  %v582_v58 = vadd.f32 %v579_v51, %v572_v49  ;;  %v556_v59 = vadd.f32 %v553_v52, %v546_v45  ;;  %v529_v11 = vadd.f32 %v527_v55, %v521_v62 }
 0x22f   : > { %v583_v63 = vadd.f32 %v580_v56, %v573_v54 }
 0x230   : > { %v588_v5 = vrot.slane %v555_v57, 1  ;;  %v600_v6 = vrot.slane %v582_v58, 2  ;;  %v590_v7 = vrot.slane %v556_v59, 1 }
 0x231   : > { %v602_v12 = vrot.slane %v583_v63, 2 }
 0x232   : > { %v589_v13 = vsel %vm343_vm1, %v587_v61, %v588_v5  ;;  %v601_v8 = vsel %vm356_vm2, %v599_v4, %v600_v6  ;;  %v591_v14 = vsel %vm343_vm1, %v588_v5, %v590_v7 }
 0x233   : > { %v594_v0 = vadd.f32 %v589_v13, %v528_v9  ;;  %v595_v10 = vadd.f32 %v591_v14, %v529_v11  ;;  %v603_v15 = vsel %vm356_vm2, %v600_v6, %v602_v12 }
 0x235   : > { %v606_v25 = vadd.f32 %v601_v8, %v594_v0  ;;  %v607_v17 = vadd.f32 %v603_v15, %v595_v10 }
 0x237   : > { %v613_v26 = vadd.f32 %v854_v20, %v606_v25  ;;  %v614_v27 = vadd.f32 %v854_v20, %v607_v17 }
 0x239   : > { %v615_v18 = vmax.f32 %v613_v26, 0.0  ;;  %v616_v28 = vmax.f32 %v614_v27, 0.0 }
 0x23b   : > { %v617_v29 = vpack.c.bf16 %v616_v28, %v615_v18 }
 0x23d   : > { %939 = vmatmul.mubr.bf16.vlgmr.msra.gmra.mrb[0].mxu1 %v617_v29 }
 0x310   : > { %v722_v21 = vpop.f32.mrb[0].mxu1 }
 0x311   : > { %v723_v24 = vadd.f32 %v855_v19, %v722_v21  ;;  %v940_v30 = vpop.f32.mrb[1].mxu1 }
 0x312   : > { %v725_v33 = vpop.f32.mrb[2].mxu1 }
 0x313   : > { %v729_v34 = vmax.f32 %v723_v24, 0.0  ;;  %v726_v22 = vadd.f32 %v855_v19, %v725_v33  ;;  %v941_v35 = vpop.f32.mrb[3].mxu1 }
 0x315   : > { %v730_v32 = vmax.f32 %v726_v22, 0.0  ;;  %v731_v23 = vadd.f32 %v877_v3, %v729_v34 }
 0x317   : > { %v732_v36 = vadd.f32 %v878_v2, %v730_v32 }
 0x319   : > { %v882_v37 = vpack.c.bf16 %v732_v36, %v731_v23 }
 0x31b   : > { %883 = vst [vmem:[%s232_s15] sm:$0xff] %v882_v37  }
 0x31c   : > { %1057 = shalt.err (!%p1054_p7)
}
 0x31d   : > { %s1058_s8 = scalar_lea.hbm %s1377_s25, 128  ;;  %s1062_s11 = scalar_lea.hbm %s1427_s5, 256 }
 0x31e   : > { %p1059_p8 = scmp.ne.s32.totalorder %s1377_s25, %s1058_s8  ;;  %p1063_p1 = scmp.lt.u32.totalorder %s1377_s25, %s1427_s5 }
 0x31f   : > { %p1064_p0 = scmp.lt.u32.totalorder %s1062_s11, %s1058_s8  ;;  %p1066_p6 = scmp.lt.u32.totalorder %s1058_s8, %s1377_s25 }
 0x320   : > { %p1060_p11 = pnand %p1059_p8, %p1438_p9 }
 0x321   : > { %p1065_p5 = por %p1064_p0, %p1063_p1 }
 0x322   : > { %p1061_p13 = pneg %p1060_p11 }
 0x323   : > { %p1067_p10 = por %p1066_p6, %p1065_p5 }
 0x325   : > { %p1068_p12 = pnand %p1067_p10, %p1061_p13 }
 0x327   : > { %1071 = shalt.err (!%p1068_p12)
}
 0x328   : > { %s1120_s14 = smov 64   ;;  %s1121_s15 = smov 4  }
 0x329   : > { %946 = dma.vmem_to_hbm [thread:$0]  (%p1438_p9), %s1379_s16, 128, %s1377_s25, %s1381_s22, %s1120_s14, %s1120_s14, %s1121_s15  }
 0x32a PF: > { %p958_p2 = scmp.ge.s32.totalorder %s1110_s21, 2  ;;  %s772_s17 = sand.u32 1, %s1098_s18  }
 0x32b   : > { %p1439_p3 = scmp.ne.s32.totalorder %s1432_s29, 0  ;;  %s773_s23 = scalar_lea.sflag [#allocation5], %s772_s17 }
 0x32d   : > { %p953_p4 = pnand %p958_p2, %p1439_p3 }
 0x32f   : > { %1093 = dma.done.wait (!%p953_p4), %s773_s23, 128  }
 0x330   : > { %1095 = vsyncadd (!%p953_p4), %s773_s23, 4294967168  ;;  %p16_p7 = scmp.ge.s32.totalorder %s1177_s24, 4   ;;  %s1440_s18 = smov %s1102_s19 }
 0x331   : > { %s1441_s19 = smov %s1106_s20  ;;  %s1442_s20 = smov %s1188_s27 }
 0x332   : > { %s1443_s21 = smov %s1177_s24  ;;  %18 = sbr.rel (!%p16_p7) target bundleno = 4 (0x4), region = 82 }
 0x339   :  { %778 = vsyncpa [#allocation4], 1 }
 0x33a   :  { %780 = vsyncpa [#allocation4 + $0x1], 1 }
 0x33b   :  { %781 = vsyncpa [#allocation5], 1 }
 0x33c   :  { %783 = vsyncpa [#allocation5 + $0x1], 1 }

</bundles_post_ra>
